<compile_context>
chip_gen: v7x
topology: tpu7x:2x2x1
jax: 0.10.0
libtpu: 0.0.40
codegen_flags: <defaults>
</compile_context>

<pallas_src>
import numpy as np

import jax
import jax.numpy as jnp
from jax.experimental import pallas as pl
from jax.experimental.pallas import tpu as pltpu


def _elbo_kernel(ti_ref, tj_ref, scale_ref,                  # scalar prefetch (SMEM)
                 waug_i_ref, waug_j_ref, xtx_ref,            # (K+1,TP), (K+1,TP), (TP,TP)
                 gamma_ref, beta_mu_ref, bpt_ref,            # (K,TP) x3
                 pi_ref, xx_ref, ytx_ref,                    # (1,TP) x3
                 out_ref,                                    # (8,TP) per-chunk partials
                 acc_ref):                                   # (K+1,TP) f32 scratch
    c = pl.program_id(0)
    s = pl.program_id(1)
    pps = pl.num_programs(1)
    g = c * pps + s

    k = gamma_ref.shape[0]                 # K (static)
    scale_i = scale_ref[g]                 # 0 = padding, 1 = diagonal, 2 = off-diag (symmetric fold)
    scale = scale_i.astype(jnp.float32)

    @pl.when(s == 0)
    def _init():
        acc_ref[...] = jnp.zeros_like(acc_ref)
        out_ref[...] = jnp.zeros_like(out_ref)

    # ---- quadratic (ll3) term: one fused MXU pass per XtX tile ------------
    # rows 0..K-1 of t_aug = W_i^T @ XtX_ij, row K = beta_all_i @ XtX_ij.
    t_aug = jnp.dot(waug_i_ref[...], xtx_ref[...],
                    preferred_element_type=jnp.float32)       # (K+1, TP)
    acc_ref[...] += scale * (t_aug * waug_j_ref[...].astype(jnp.float32))

    # ---- per-SNP (row-tile) terms: exactly once, on each diagonal tile ----
    is_diag = jnp.logical_and(ti_ref[g] == tj_ref[g], scale_i != 0)

    @pl.when(is_diag)
    def _row_terms():
        gam = gamma_ref[...]                                  # (K, TP)
        b = beta_mu_ref[...]
        gbb = gam * b * b
        beta_all = waug_i_ref[k:k + 1, :].astype(jnp.float32)  # (1, TP)

        # likelihood lanes (the y_tau factor is applied in the wrapper)
        ll_lane = (beta_all * ytx_ref[...]
                   - 0.5 * jnp.sum(gbb, axis=0, keepdims=True) * xx_ref[...])

        # KL lanes (no y_tau factor)
        gam_safe = jnp.where(gam != 0.0, gam, 1.0)
        mkl_lane = (-0.5 * jnp.sum(bpt_ref[...] * gbb, axis=0, keepdims=True)
                    + jnp.sum(gam, axis=0, keepdims=True) * pi_ref[...]
                    - jnp.sum(jnp.where(gam != 0.0, gam * jnp.log(gam_safe), 0.0),
                              axis=0, keepdims=True))

        out_ref[0:1, :] += ll_lane
        out_ref[1:2, :] += mkl_lane

    # ---- finalize: fold the quadratic accumulator into the ll lanes -------
    @pl.when(s == pps - 1)
    def _finalize():
        acc = acc_ref[...]                                    # (K+1, TP)
        # per-lane (WtRW.sum() - trace(WtRW)) contribution:
        #   2 * row_K - colsum  ==  full_sum_lane - diag_sum_lane
        quad = 2.0 * acc[k:k + 1, :] - jnp.sum(acc, axis=0, keepdims=True)
        out_ref[0:1, :] += -0.5 * quad


def sparsepro_elbo(gamma, beta_mu, beta_prior_tau, prior_pi, y_tau,
                   XX, ytX, XtX, LD=None, *, tp=512, n_chunks=2,
                   assume_symmetric=True, compute_dtype=jnp.float32):
    """Compute the SparsePro ELBO (scalar) with a Pallas TPU kernel.

    assume_symmetric=True exploits XtX == XtX^T (true for a Gram matrix X^T X)
    to read only the upper-triangular tiles; set False for arbitrary XtX.
    compute_dtype=jnp.bfloat16 optionally streams XtX/W in bf16 (f32 accum).
    """
    del LD  # not used by the forward pass
    P, K = gamma.shape
    tp = min(tp, P)
    assert P % 128 == 0 and tp % 128 == 0 and P % tp == 0, \
        "P and tile size must be multiples of 128 and P % tp == 0"
    n = P // tp
    f32 = jnp.float32

    # ---- lane-dense (transposed) operands ---------------------------------
    gamma_t = gamma.T.astype(f32)                       # (K, P)
    beta_mu_t = beta_mu.T.astype(f32)                   # (K, P)
    bpt_t = beta_prior_tau.T.astype(f32)                # (K, P)
    w_t = gamma_t * beta_mu_t
    w_aug = jnp.concatenate(
        [w_t, jnp.sum(w_t, axis=0, keepdims=True)], axis=0).astype(compute_dtype)  # (K+1, P)
    xtx = XtX.astype(compute_dtype)                     # (P, P)
    pi_2d = prior_pi.reshape(1, P).astype(f32)
    xx_2d = XX.reshape(1, P).astype(f32)
    ytx_2d = ytX.reshape(1, P).astype(f32)

    # ---- tile-pair schedule (scalar prefetch) ------------------------------
    if assume_symmetric:
        pairs = [(i, j) for i in range(n) for j in range(i, n)]
        weights = [1 if i == j else 2 for (i, j) in pairs]
    else:
        pairs = [(i, j) for i in range(n) for j in range(n)]
        weights = [1] * len(pairs)
    n_pairs = len(pairs)
    n_chunks = max(1, min(n_chunks, n_pairs))
    pps = -(-n_pairs // n_chunks)                       # pairs per chunk (ceil)
    pad = n_chunks * pps - n_pairs
    pairs = pairs + [pairs[-1]] * pad                   # padded steps get weight 0
    weights = weights + [0] * pad

    ti = jnp.asarray(np.array([p[0] for p in pairs], dtype=np.int32))
    tj = jnp.asarray(np.array([p[1] for p in pairs], dtype=np.int32))
    scale = jnp.asarray(np.array(weights, dtype=np.int32))

    # ---- BlockSpecs ---------------------------------------------------------
    spec_waug_i = pl.BlockSpec((K + 1, tp),
                               lambda c, s, ti_r, tj_r, sc_r: (0, ti_r[c * pps + s]))
    spec_waug_j = pl.BlockSpec((K + 1, tp),
                               lambda c, s, ti_r, tj_r, sc_r: (0, tj_r[c * pps + s]))
    spec_xtx = pl.BlockSpec((tp, tp),
                            lambda c, s, ti_r, tj_r, sc_r:
                            (ti_r[c * pps + s], tj_r[c * pps + s]))
    spec_k_i = pl.BlockSpec((K, tp),
                            lambda c, s, ti_r, tj_r, sc_r: (0, ti_r[c * pps + s]))
    spec_1_i = pl.BlockSpec((1, tp),
                            lambda c, s, ti_r, tj_r, sc_r: (0, ti_r[c * pps + s]))
    out_spec = pl.BlockSpec((8, tp), lambda c, s, ti_r, tj_r, sc_r: (c, 0))

    # ---- VMEM budget (double-buffered inputs + resident output + scratch) --
    item_c = jnp.dtype(compute_dtype).itemsize
    vmem_bytes = (
        2 * tp * tp * item_c                  # XtX tile, double-buffered
        + 2 * 2 * (K + 1) * tp * item_c       # W_aug (i and j sides)
        + 2 * 3 * K * tp * 4                  # gamma / beta_mu / beta_prior_tau
        + 2 * 3 * 1 * tp * 4                  # prior_pi / XX / ytX
        + 2 * 8 * tp * 4                      # output block
        + (K + 1) * tp * 4                    # accumulator scratch
    )
    vmem_limit = int(max(vmem_bytes + (2 << 20), 32 << 20))  # <= v7x 64 MiB physical

    grid_spec = pltpu.PrefetchScalarGridSpec(
        num_scalar_prefetch=3,
        grid=(n_chunks, pps),
        in_specs=[spec_waug_i, spec_waug_j, spec_xtx,
                  spec_k_i, spec_k_i, spec_k_i,
                  spec_1_i, spec_1_i, spec_1_i],
        out_specs=out_spec,
        scratch_shapes=[pltpu.VMEM((K + 1, tp), jnp.float32)],
    )

    out = pl.pallas_call(
        _elbo_kernel,
        out_shape=jax.ShapeDtypeStruct((n_chunks * 8, tp), f32),
        grid_spec=grid_spec,
        compiler_params=pltpu.CompilerParams(
            dimension_semantics=("parallel", "arbitrary"),
            vmem_limit_bytes=vmem_limit),
    )(ti, tj, scale,
      w_aug, w_aug, xtx,
      gamma_t, beta_mu_t, bpt_t,
      pi_2d, xx_2d, ytx_2d)

    out3 = out.reshape(n_chunks, 8, tp)
    y_tau_f = jnp.asarray(y_tau, f32)
    # row 0: likelihood lanes (x y_tau), row 1: KL lanes, rows 2..7: zeros.
    return y_tau_f * jnp.sum(out3[:, 0, :]) + jnp.sum(out3[:, 1, :])


def elbo_reference(gamma, beta_mu, beta_prior_tau, prior_pi, y_tau, XX, ytX, XtX):
    """Pure-JAX transcription of SparsePro.forward for verification."""
    W = gamma * beta_mu
    beta_all = W.sum(axis=1)
    ll1 = y_tau * (beta_all @ ytX)
    ll2 = -0.5 * y_tau * jnp.sum((gamma * beta_mu ** 2).sum(axis=1) * XX)
    WtRW = W.T @ XtX @ W
    ll3 = -0.5 * y_tau * (WtRW.sum() - jnp.trace(WtRW))
    betaterm1 = -0.5 * jnp.sum(beta_prior_tau * gamma * beta_mu ** 2)
    gammaterm1 = jnp.sum(gamma * prior_pi[:, None])
    g_safe = jnp.where(gamma != 0.0, gamma, 1.0)
    gammaterm2 = jnp.sum(jnp.where(gamma != 0.0, gamma * jnp.log(g_safe), 0.0))
    return ll1 + ll2 + ll3 + betaterm1 + gammaterm1 - gammaterm2


if __name__ == "__main__":
    # Small, deterministic synthetic problem.
    P, K = 512, 4
    var_Y, h2, var_b = 1.0, 0.25, 0.05

    key = jax.random.PRNGKey(0)
    k_bm, k_xx, k_ytx, k_xtx = jax.random.split(key, 4)

    # Parameters (shapes/values as in SparsePro.__init__, with a small
    # deterministic beta_mu perturbation so the quadratic path is exercised).
    gamma = jnp.full((P, K), 1.0 / P, dtype=jnp.float32)
    beta_mu = 0.1 * jax.random.normal(k_bm, (P, K), dtype=jnp.float32)
    beta_prior_tau = jnp.tile(
        (1.0 / var_b) * jnp.arange(1, K + 1, dtype=jnp.float32)[None, :], (P, 1))
    prior_pi = jnp.full((P,), 1.0 / P, dtype=jnp.float32)
    y_tau = 1.0 / (var_Y * (1.0 - h2))

    # Forward inputs.
    XX = 1.0 + jax.random.uniform(k_xx, (P,), dtype=jnp.float32)
    ytX = jax.random.normal(k_ytx, (P,), dtype=jnp.float32)
    A = jax.random.normal(k_xtx, (P, P), dtype=jnp.float32)
    XtX = (A @ A.T) / P                       # symmetric PSD, like a real X^T X
    LD = XtX / jnp.sqrt(XX[:, None] * XX[None, :])  # unused by forward

    ref = elbo_reference(gamma, beta_mu, beta_prior_tau, prior_pi, y_tau,
                         XX, ytX, XtX)

    # (1) tiled + symmetric (triangular schedule, 2 parallel chunks, padding).
    e1 = jax.block_until_ready(
        sparsepro_elbo(gamma, beta_mu, beta_prior_tau, prior_pi, y_tau,
                       XX, ytX, XtX, LD, tp=256))
    assert jnp.allclose(e1, ref, rtol=1e-4, atol=1e-4), (e1, ref)

    # (2) single-tile path (tp == P).
    e2 = jax.block_until_ready(
        sparsepro_elbo(gamma, beta_mu, beta_prior_tau, prior_pi, y_tau,
                       XX, ytX, XtX, LD))
    assert jnp.allclose(e2, ref, rtol=1e-4, atol=1e-4), (e2, ref)

    # (3) non-symmetric full-enumeration path.
    e3 = jax.block_until_ready(
        sparsepro_elbo(gamma, beta_mu, beta_prior_tau, prior_pi, y_tau,
                       XX, ytX, XtX, LD, tp=256, assume_symmetric=False))
    assert jnp.allclose(e3, ref, rtol=1e-4, atol=1e-4), (e3, ref)

    print("KERNEL_OK")
</pallas_src>

<mosaic_0001>
module attributes {stable_mosaic.version = 11 : i64} {
  func.func @_elbo_kernel(%arg0: i32, %arg1: i32, %arg2: memref<4xi32, #tpu.memory_space<smem>>, %arg3: memref<4xi32, #tpu.memory_space<smem>>, %arg4: memref<4xi32, #tpu.memory_space<smem>>, %arg5: memref<5x256xf32, #tpu.memory_space<vmem>>, %arg6: memref<5x256xf32, #tpu.memory_space<vmem>>, %arg7: memref<256x256xf32, #tpu.memory_space<vmem>>, %arg8: memref<4x256xf32, #tpu.memory_space<vmem>>, %arg9: memref<4x256xf32, #tpu.memory_space<vmem>>, %arg10: memref<4x256xf32, #tpu.memory_space<vmem>>, %arg11: memref<1x256xf32, #tpu.memory_space<vmem>>, %arg12: memref<1x256xf32, #tpu.memory_space<vmem>>, %arg13: memref<1x256xf32, #tpu.memory_space<vmem>>, %arg14: memref<8x256xf32, #tpu.memory_space<vmem>>, %arg15: memref<5x256xf32, #tpu.memory_space<vmem>>) attributes {dimension_semantics = [#tpu.dimension_semantics<parallel>, #tpu.dimension_semantics<arbitrary>], iteration_bounds = array<i64: 2, 2>, scalar_prefetch = 3 : i64, scratch_operands = 1 : i64, tpu.core_type = #tpu.core_type<tc>, window_params = [{transform_indices = @transform_0, window_bounds = array<i64: 5, 256>}, {transform_indices = @transform_1, window_bounds = array<i64: 5, 256>}, {transform_indices = @transform_2, window_bounds = array<i64: 256, 256>}, {transform_indices = @transform_3, window_bounds = array<i64: 4, 256>}, {transform_indices = @transform_4, window_bounds = array<i64: 4, 256>}, {transform_indices = @transform_5, window_bounds = array<i64: 4, 256>}, {transform_indices = @transform_6, window_bounds = array<i64: 1, 256>}, {transform_indices = @transform_7, window_bounds = array<i64: 1, 256>}, {transform_indices = @transform_8, window_bounds = array<i64: 1, 256>}, {transform_indices = @transform_9, window_bounds = array<i64: 8, 256>}]} {
    %c2_i32 = arith.constant 2 : i32
    %0 = arith.muli %arg0, %c2_i32 : i32
    %1 = arith.addi %0, %arg1 : i32
    %2 = arith.index_cast %1 : i32 to index
    %3 = memref.load %arg4[%2] : memref<4xi32, #tpu.memory_space<smem>>
    %4 = arith.sitofp %3 : i32 to f32
    %c0_i32 = arith.constant 0 : i32
    %5 = arith.cmpi eq, %arg1, %c0_i32 : i32
    %6 = arith.extui %5 : i1 to i32
    %c0_i32_0 = arith.constant 0 : i32
    %7 = arith.cmpi ne, %6, %c0_i32_0 : i32
    scf.if %7 {
      %cst_13 = arith.constant 0.000000e+00 : f32
      %30 = vector.broadcast %cst_13 : f32 to vector<5x256xf32>
      %c0_14 = arith.constant 0 : index
      %c0_15 = arith.constant 0 : index
      %31 = vector.load %arg15[%c0_14, %c0_15] : memref<5x256xf32, #tpu.memory_space<vmem>>, vector<5x256xf32>
      tpu.vector_store %arg15[%c0_14, %c0_15], %30 {strides = array<i32>} : memref<5x256xf32, #tpu.memory_space<vmem>>, vector<5x256xf32>,
      %cst_16 = arith.constant 0.000000e+00 : f32
      %32 = vector.broadcast %cst_16 : f32 to vector<8x256xf32>
      %c0_17 = arith.constant 0 : index
      %c0_18 = arith.constant 0 : index
      %33 = vector.load %arg14[%c0_17, %c0_18] : memref<8x256xf32, #tpu.memory_space<vmem>>, vector<8x256xf32>
      tpu.vector_store %arg14[%c0_17, %c0_18], %32 {strides = array<i32>} : memref<8x256xf32, #tpu.memory_space<vmem>>, vector<8x256xf32>,
    } else {
    }
    %c0 = arith.constant 0 : index
    %c0_1 = arith.constant 0 : index
    %8 = vector.load %arg5[%c0, %c0_1] : memref<5x256xf32, #tpu.memory_space<vmem>>, vector<5x256xf32>
    %c0_2 = arith.constant 0 : index
    %c0_3 = arith.constant 0 : index
    %9 = vector.load %arg7[%c0_2, %c0_3] : memref<256x256xf32, #tpu.memory_space<vmem>>, vector<256x256xf32>
    %cst = arith.constant dense<0.000000e+00> : vector<5x256xf32>
    %10 = tpu.matmul %8, %9, %cst {dimension_numbers = #tpu.dot_dimension_numbers<[1], [0], [0], [1], [0, 0, 1, 1], [], []>} : vector<5x256xf32>, vector<256x256xf32>, vector<5x256xf32> -> vector<5x256xf32>
    %c0_4 = arith.constant 0 : index
    %c0_5 = arith.constant 0 : index
    %11 = vector.load %arg15[%c0_4, %c0_5] : memref<5x256xf32, #tpu.memory_space<vmem>>, vector<5x256xf32>
    %c0_6 = arith.constant 0 : index
    %c0_7 = arith.constant 0 : index
    %12 = vector.load %arg6[%c0_6, %c0_7] : memref<5x256xf32, #tpu.memory_space<vmem>>, vector<5x256xf32>
    %13 = arith.mulf %10, %12 : vector<5x256xf32>
    %14 = vector.broadcast %4 : f32 to vector<5x256xf32>
    %15 = arith.mulf %14, %13 : vector<5x256xf32>
    %16 = arith.addf %11, %15 : vector<5x256xf32>
    %c0_8 = arith.constant 0 : index
    %c0_9 = arith.constant 0 : index
    %17 = vector.load %arg15[%c0_8, %c0_9] : memref<5x256xf32, #tpu.memory_space<vmem>>, vector<5x256xf32>
    tpu.vector_store %arg15[%c0_8, %c0_9], %16 {strides = array<i32>} : memref<5x256xf32, #tpu.memory_space<vmem>>, vector<5x256xf32>,
    %18 = arith.index_cast %1 : i32 to index
    %19 = memref.load %arg2[%18] : memref<4xi32, #tpu.memory_space<smem>>
    %20 = arith.index_cast %1 : i32 to index
    %21 = memref.load %arg3[%20] : memref<4xi32, #tpu.memory_space<smem>>
    %22 = arith.cmpi eq, %19, %21 : i32
    %c0_i32_10 = arith.constant 0 : i32
    %23 = arith.cmpi ne, %3, %c0_i32_10 : i32
    %24 = arith.andi %22, %23 : i1
    %25 = arith.extui %24 : i1 to i32
    %c0_i32_11 = arith.constant 0 : i32
    %26 = arith.cmpi ne, %25, %c0_i32_11 : i32
    scf.if %26 {
      %c0_13 = arith.constant 0 : index
      %c0_14 = arith.constant 0 : index
      %30 = vector.load %arg8[%c0_13, %c0_14] : memref<4x256xf32, #tpu.memory_space<vmem>>, vector<4x256xf32>
      %c0_15 = arith.constant 0 : index
      %c0_16 = arith.constant 0 : index
      %31 = vector.load %arg9[%c0_15, %c0_16] : memref<4x256xf32, #tpu.memory_space<vmem>>, vector<4x256xf32>
      %32 = arith.mulf %30, %31 : vector<4x256xf32>
      %33 = arith.mulf %32, %31 : vector<4x256xf32>
      %c4 = arith.constant 4 : index
      %c0_17 = arith.constant 0 : index
      %34 = vector.load %arg5[%c4, %c0_17] : memref<5x256xf32, #tpu.memory_space<vmem>>, vector<1x256xf32>
      %c0_18 = arith.constant 0 : index
      %c0_19 = arith.constant 0 : index
      %35 = vector.load %arg13[%c0_18, %c0_19] : memref<1x256xf32, #tpu.memory_space<vmem>>, vector<1x256xf32>
      %36 = arith.mulf %34, %35 : vector<1x256xf32>
      %cst_20 = arith.constant dense<0.000000e+00> : vector<256xf32>
      %37 = vector.multi_reduction <add>, %33, %cst_20 [0] : vector<4x256xf32> to vector<256xf32>
      %38 = vector.shape_cast %37 : vector<256xf32> to vector<1x256xf32>
      %cst_21 = arith.constant 5.000000e-01 : f32
      %39 = vector.broadcast %cst_21 : f32 to vector<1x256xf32>
      %40 = arith.mulf %39, %38 : vector<1x256xf32>
      %c0_22 = arith.constant 0 : index
      %c0_23 = arith.constant 0 : index
      %41 = vector.load %arg12[%c0_22, %c0_23] : memref<1x256xf32, #tpu.memory_space<vmem>>, vector<1x256xf32>
      %42 = arith.mulf %40, %41 : vector<1x256xf32>
      %43 = arith.subf %36, %42 : vector<1x256xf32>
      %cst_24 = arith.constant 0.000000e+00 : f32
      %44 = vector.broadcast %cst_24 : f32 to vector<4x256xf32>
      %45 = arith.cmpf one, %30, %44 : vector<4x256xf32>
      %cst_25 = arith.constant 1.000000e+00 : f32
      %46 = vector.broadcast %cst_25 : f32 to vector<4x256xf32>
      %47 = arith.select %45, %30, %46 : vector<4x256xi1>, vector<4x256xf32>
      %c0_26 = arith.constant 0 : index
      %c0_27 = arith.constant 0 : index
      %48 = vector.load %arg10[%c0_26, %c0_27] : memref<4x256xf32, #tpu.memory_space<vmem>>, vector<4x256xf32>
      %49 = arith.mulf %48, %33 : vector<4x256xf32>
      %cst_28 = arith.constant dense<0.000000e+00> : vector<256xf32>
      %50 = vector.multi_reduction <add>, %49, %cst_28 [0] : vector<4x256xf32> to vector<256xf32>
      %51 = vector.shape_cast %50 : vector<256xf32> to vector<1x256xf32>
      %cst_29 = arith.constant -5.000000e-01 : f32
      %52 = vector.broadcast %cst_29 : f32 to vector<1x256xf32>
      %53 = arith.mulf %52, %51 : vector<1x256xf32>
      %cst_30 = arith.constant dense<0.000000e+00> : vector<256xf32>
      %54 = vector.multi_reduction <add>, %30, %cst_30 [0] : vector<4x256xf32> to vector<256xf32>
      %55 = vector.shape_cast %54 : vector<256xf32> to vector<1x256xf32>
      %c0_31 = arith.constant 0 : index
      %c0_32 = arith.constant 0 : index
      %56 = vector.load %arg11[%c0_31, %c0_32] : memref<1x256xf32, #tpu.memory_space<vmem>>, vector<1x256xf32>
      %57 = arith.mulf %55, %56 : vector<1x256xf32>
      %58 = arith.addf %53, %57 : vector<1x256xf32>
      %cst_33 = arith.constant 0.000000e+00 : f32
      %59 = vector.broadcast %cst_33 : f32 to vector<4x256xf32>
      %60 = arith.cmpf one, %30, %59 : vector<4x256xf32>
      %61 = math.log %47 : vector<4x256xf32>
      %62 = arith.mulf %30, %61 : vector<4x256xf32>
      %cst_34 = arith.constant 0.000000e+00 : f32
      %63 = vector.broadcast %cst_34 : f32 to vector<4x256xf32>
      %64 = arith.select %60, %62, %63 : vector<4x256xi1>, vector<4x256xf32>
      %cst_35 = arith.constant dense<0.000000e+00> : vector<256xf32>
      %65 = vector.multi_reduction <add>, %64, %cst_35 [0] : vector<4x256xf32> to vector<256xf32>
      %66 = vector.shape_cast %65 : vector<256xf32> to vector<1x256xf32>
      %67 = arith.subf %58, %66 : vector<1x256xf32>
      %c0_36 = arith.constant 0 : index
      %c0_37 = arith.constant 0 : index
      %68 = vector.load %arg14[%c0_36, %c0_37] : memref<8x256xf32, #tpu.memory_space<vmem>>, vector<1x256xf32>
      %69 = arith.addf %68, %43 : vector<1x256xf32>
      %c0_38 = arith.constant 0 : index
      %c0_39 = arith.constant 0 : index
      %70 = vector.load %arg14[%c0_38, %c0_39] : memref<8x256xf32, #tpu.memory_space<vmem>>, vector<1x256xf32>
      tpu.vector_store %arg14[%c0_38, %c0_39], %69 {strides = array<i32>} : memref<8x256xf32, #tpu.memory_space<vmem>>, vector<1x256xf32>,
      %c1 = arith.constant 1 : index
      %c0_40 = arith.constant 0 : index
      %71 = vector.load %arg14[%c1, %c0_40] : memref<8x256xf32, #tpu.memory_space<vmem>>, vector<1x256xf32>
      %72 = arith.addf %71, %67 : vector<1x256xf32>
      %c1_41 = arith.constant 1 : index
      %c0_42 = arith.constant 0 : index
      %73 = vector.load %arg14[%c1_41, %c0_42] : memref<8x256xf32, #tpu.memory_space<vmem>>, vector<1x256xf32>
      tpu.vector_store %arg14[%c1_41, %c0_42], %72 {strides = array<i32>} : memref<8x256xf32, #tpu.memory_space<vmem>>, vector<1x256xf32>,
    } else {
    }
    %c1_i32 = arith.constant 1 : i32
    %27 = arith.cmpi eq, %arg1, %c1_i32 : i32
    %28 = arith.extui %27 : i1 to i32
    %c0_i32_12 = arith.constant 0 : i32
    %29 = arith.cmpi ne, %28, %c0_i32_12 : i32
    scf.if %29 {
      %c0_13 = arith.constant 0 : index
      %c0_14 = arith.constant 0 : index
      %30 = vector.load %arg15[%c0_13, %c0_14] : memref<5x256xf32, #tpu.memory_space<vmem>>, vector<5x256xf32>
      %31 = vector.extract_strided_slice %30 {offsets = [4, 0], sizes = [1, 256], strides = [1, 1]} : vector<5x256xf32> to vector<1x256xf32>
      %cst_15 = arith.constant 2.000000e+00 : f32
      %32 = vector.broadcast %cst_15 : f32 to vector<1x256xf32>
      %33 = arith.mulf %32, %31 : vector<1x256xf32>
      %cst_16 = arith.constant dense<0.000000e+00> : vector<256xf32>
      %34 = vector.multi_reduction <add>, %30, %cst_16 [0] : vector<5x256xf32> to vector<256xf32>
      %35 = vector.shape_cast %34 : vector<256xf32> to vector<1x256xf32>
      %36 = arith.subf %33, %35 : vector<1x256xf32>
      %c0_17 = arith.constant 0 : index
      %c0_18 = arith.constant 0 : index
      %37 = vector.load %arg14[%c0_17, %c0_18] : memref<8x256xf32, #tpu.memory_space<vmem>>, vector<1x256xf32>
      %cst_19 = arith.constant -5.000000e-01 : f32
      %38 = vector.broadcast %cst_19 : f32 to vector<1x256xf32>
      %39 = arith.mulf %38, %36 : vector<1x256xf32>
      %40 = arith.addf %37, %39 : vector<1x256xf32>
      %c0_20 = arith.constant 0 : index
      %c0_21 = arith.constant 0 : index
      %41 = vector.load %arg14[%c0_20, %c0_21] : memref<8x256xf32, #tpu.memory_space<vmem>>, vector<1x256xf32>
      tpu.vector_store %arg14[%c0_20, %c0_21], %40 {strides = array<i32>} : memref<8x256xf32, #tpu.memory_space<vmem>>, vector<1x256xf32>,
    } else {
    }
    return
  }
  func.func @transform_0(%arg0: i32, %arg1: i32, %arg2: memref<4xi32, #tpu.memory_space<smem>>, %arg3: memref<4xi32, #tpu.memory_space<smem>>, %arg4: memref<4xi32, #tpu.memory_space<smem>>) -> (i32, i32) {
    %c2_i32 = arith.constant 2 : i32
    %0 = arith.muli %arg0, %c2_i32 : i32
    %1 = arith.addi %0, %arg1 : i32
    %2 = arith.index_cast %1 : i32 to index
    %3 = memref.load %arg2[%2] : memref<4xi32, #tpu.memory_space<smem>>
    %c0_i32 = arith.constant 0 : i32
    %c0_i32_0 = arith.constant 0 : i32
    return %c0_i32, %3 : i32, i32
  }
  func.func @transform_1(%arg0: i32, %arg1: i32, %arg2: memref<4xi32, #tpu.memory_space<smem>>, %arg3: memref<4xi32, #tpu.memory_space<smem>>, %arg4: memref<4xi32, #tpu.memory_space<smem>>) -> (i32, i32) {
    %c2_i32 = arith.constant 2 : i32
    %0 = arith.muli %arg0, %c2_i32 : i32
    %1 = arith.addi %0, %arg1 : i32
    %2 = arith.index_cast %1 : i32 to index
    %3 = memref.load %arg3[%2] : memref<4xi32, #tpu.memory_space<smem>>
    %c0_i32 = arith.constant 0 : i32
    %c0_i32_0 = arith.constant 0 : i32
    return %c0_i32, %3 : i32, i32
  }
  func.func @transform_2(%arg0: i32, %arg1: i32, %arg2: memref<4xi32, #tpu.memory_space<smem>>, %arg3: memref<4xi32, #tpu.memory_space<smem>>, %arg4: memref<4xi32, #tpu.memory_space<smem>>) -> (i32, i32) {
    %c2_i32 = arith.constant 2 : i32
    %0 = arith.muli %arg0, %c2_i32 : i32
    %1 = arith.addi %0, %arg1 : i32
    %2 = arith.index_cast %1 : i32 to index
    %3 = memref.load %arg2[%2] : memref<4xi32, #tpu.memory_space<smem>>
    %c2_i32_0 = arith.constant 2 : i32
    %4 = arith.muli %arg0, %c2_i32_0 : i32
    %5 = arith.addi %4, %arg1 : i32
    %6 = arith.index_cast %5 : i32 to index
    %7 = memref.load %arg3[%6] : memref<4xi32, #tpu.memory_space<smem>>
    %c0_i32 = arith.constant 0 : i32
    return %3, %7 : i32, i32
  }
  func.func @transform_3(%arg0: i32, %arg1: i32, %arg2: memref<4xi32, #tpu.memory_space<smem>>, %arg3: memref<4xi32, #tpu.memory_space<smem>>, %arg4: memref<4xi32, #tpu.memory_space<smem>>) -> (i32, i32) {
    %c2_i32 = arith.constant 2 : i32
    %0 = arith.muli %arg0, %c2_i32 : i32
    %1 = arith.addi %0, %arg1 : i32
    %2 = arith.index_cast %1 : i32 to index
    %3 = memref.load %arg2[%2] : memref<4xi32, #tpu.memory_space<smem>>
    %c0_i32 = arith.constant 0 : i32
    %c0_i32_0 = arith.constant 0 : i32
    return %c0_i32, %3 : i32, i32
  }
  func.func @transform_4(%arg0: i32, %arg1: i32, %arg2: memref<4xi32, #tpu.memory_space<smem>>, %arg3: memref<4xi32, #tpu.memory_space<smem>>, %arg4: memref<4xi32, #tpu.memory_space<smem>>) -> (i32, i32) {
    %c2_i32 = arith.constant 2 : i32
    %0 = arith.muli %arg0, %c2_i32 : i32
    %1 = arith.addi %0, %arg1 : i32
    %2 = arith.index_cast %1 : i32 to index
    %3 = memref.load %arg2[%2] : memref<4xi32, #tpu.memory_space<smem>>
    %c0_i32 = arith.constant 0 : i32
    %c0_i32_0 = arith.constant 0 : i32
    return %c0_i32, %3 : i32, i32
  }
  func.func @transform_5(%arg0: i32, %arg1: i32, %arg2: memref<4xi32, #tpu.memory_space<smem>>, %arg3: memref<4xi32, #tpu.memory_space<smem>>, %arg4: memref<4xi32, #tpu.memory_space<smem>>) -> (i32, i32) {
    %c2_i32 = arith.constant 2 : i32
    %0 = arith.muli %arg0, %c2_i32 : i32
    %1 = arith.addi %0, %arg1 : i32
    %2 = arith.index_cast %1 : i32 to index
    %3 = memref.load %arg2[%2] : memref<4xi32, #tpu.memory_space<smem>>
    %c0_i32 = arith.constant 0 : i32
    %c0_i32_0 = arith.constant 0 : i32
    return %c0_i32, %3 : i32, i32
  }
  func.func @transform_6(%arg0: i32, %arg1: i32, %arg2: memref<4xi32, #tpu.memory_space<smem>>, %arg3: memref<4xi32, #tpu.memory_space<smem>>, %arg4: memref<4xi32, #tpu.memory_space<smem>>) -> (i32, i32) {
    %c2_i32 = arith.constant 2 : i32
    %0 = arith.muli %arg0, %c2_i32 : i32
    %1 = arith.addi %0, %arg1 : i32
    %2 = arith.index_cast %1 : i32 to index
    %3 = memref.load %arg2[%2] : memref<4xi32, #tpu.memory_space<smem>>
    %c0_i32 = arith.constant 0 : i32
    %c0_i32_0 = arith.constant 0 : i32
    return %c0_i32, %3 : i32, i32
  }
  func.func @transform_7(%arg0: i32, %arg1: i32, %arg2: memref<4xi32, #tpu.memory_space<smem>>, %arg3: memref<4xi32, #tpu.memory_space<smem>>, %arg4: memref<4xi32, #tpu.memory_space<smem>>) -> (i32, i32) {
    %c2_i32 = arith.constant 2 : i32
    %0 = arith.muli %arg0, %c2_i32 : i32
    %1 = arith.addi %0, %arg1 : i32
    %2 = arith.index_cast %1 : i32 to index
    %3 = memref.load %arg2[%2] : memref<4xi32, #tpu.memory_space<smem>>
    %c0_i32 = arith.constant 0 : i32
    %c0_i32_0 = arith.constant 0 : i32
    return %c0_i32, %3 : i32, i32
  }
  func.func @transform_8(%arg0: i32, %arg1: i32, %arg2: memref<4xi32, #tpu.memory_space<smem>>, %arg3: memref<4xi32, #tpu.memory_space<smem>>, %arg4: memref<4xi32, #tpu.memory_space<smem>>) -> (i32, i32) {
    %c2_i32 = arith.constant 2 : i32
    %0 = arith.muli %arg0, %c2_i32 : i32
    %1 = arith.addi %0, %arg1 : i32
    %2 = arith.index_cast %1 : i32 to index
    %3 = memref.load %arg2[%2] : memref<4xi32, #tpu.memory_space<smem>>
    %c0_i32 = arith.constant 0 : i32
    %c0_i32_0 = arith.constant 0 : i32
    return %c0_i32, %3 : i32, i32
  }
  func.func @transform_9(%arg0: i32, %arg1: i32, %arg2: memref<4xi32, #tpu.memory_space<smem>>, %arg3: memref<4xi32, #tpu.memory_space<smem>>, %arg4: memref<4xi32, #tpu.memory_space<smem>>) -> (i32, i32) {
    %c0_i32 = arith.constant 0 : i32
    %c0_i32_0 = arith.constant 0 : i32
    return %arg0, %c0_i32 : i32, i32
  }
}

</mosaic_0001>

<bundles_post_ra>
// kernel: tpu_custom_call.1
= control target key start
LH: loop header
LB: loop body
LE: loop exit
PB: predicated region body
PF: predicated region fallthrough
CT: control target
= control target key end

     0   :  { %s3200_s0 = inlined_call_operand.hbm [shape: s32[4], index: 0, kind: input, shape index: {}]   ;;  %s3201_s3 = inlined_call_operand.hbm [shape: f32[5,512], index: 3, kind: input, shape index: {}]   ;;  %s3202_s4 = inlined_call_operand.hbm [shape: f32[5,512], index: 4, kind: input, shape index: {}]   ;;  %s3203_s5 = inlined_call_operand.hbm [shape: f32[512,512], index: 5, kind: input, shape index: {}]   ;;  %s3204_s6 = inlined_call_operand.vmem [shape: f32[4,512], index: 6, kind: input, shape index: {}]   ;;  %s3205_s7 = inlined_call_operand.hbm [shape: f32[4,512], index: 7, kind: input, shape index: {}]   ;;  %s3206_s8 = inlined_call_operand.hbm [shape: f32[4,512], index: 8, kind: input, shape index: {}]   ;;  %s3207_s9 = inlined_call_operand.vmem [shape: f32[1,512], index: 9, kind: input, shape index: {}]   ;;  %s3208_s10 = inlined_call_operand.vmem [shape: f32[1,512], index: 10, kind: input, shape index: {}]   ;;  %s3209_s11 = inlined_call_operand.vmem [shape: f32[1,512], index: 11, kind: input, shape index: {}]   ;;  %s3210_s12 = inlined_call_operand.hbm [shape: f32[16,256], index: 12, kind: output, shape index: {}]   ;;  %s3211_s1 = inlined_call_operand.vmem [shape: s32[4], index: 1, kind: input, shape index: {}]   ;;  %s3212_s2 = inlined_call_operand.vmem [shape: s32[4], index: 2, kind: input, shape index: {}]  }
   0x1   :  { %3257 = sst [smem:[#allocation64_spill]] %s3201_s3  ;;  %s1775_s23 = scalar_lea.hbm %s3200_s0, 16 }
   0x2   :  { %3258 = sst [smem:[#allocation65_spill]] %s3202_s4  ;;  %p1776_p0 = scmp.ne.s32.totalorder %s3200_s0, %s1775_s23 }
   0x3   :  { %3259 = sst [smem:[#allocation66_spill]] %s3203_s5  ;;  %p1779_p1 = scmp.lt.u32.totalorder %s1775_s23, %s3200_s0 }
   0x4   :  { %3260 = sst [smem:[#allocation67_spill]] %s3204_s6 }
   0x5   :  { %3261 = sst [smem:[#allocation68_spill]] %s3205_s7  ;;  %p1781_p2 = pnand %p1779_p1, %p1776_p0 }
   0x6   :  { %3262 = sst [smem:[#allocation69_spill]] %s3206_s8 }
   0x7   :  { %3263 = sst [smem:[#allocation70_spill]] %s3207_s9 }
   0x8   :  { %3264 = sst [smem:[#allocation71_spill]] %s3208_s10 }
   0x9   :  { %3265 = sst [smem:[#allocation72_spill]] %s3209_s11 }
   0xa   :  { %3266 = sst [smem:[#allocation73_spill]] %s3210_s12 }
   0xb   :  { %1784 = shalt.err (!%p1781_p2)  }
   0xc   :  { %s2197_s28 = smov [#allocation4]   ;;  %s19_s15 = sshll.u32 %s3211_s1, 4  ;;  %s20_s15 = int_to_ptr.vmem [resolvable:$true] %s19_s15 }
   0xd   :  { %18 = dma.hbm_to_smem %s3200_s0, 16, %s2197_s28, [#allocation3] }
   0xe   :  { %s23_s18 = sshll.u32 %s3212_s2, 4  ;;  %s1785_s19 = scalar_lea.vmem %s20_s15, 16  ;;  %s24_s18 = int_to_ptr.vmem [resolvable:$true] %s23_s18 }
   0xf   :  { %p1786_p3 = scmp.ne.s32.totalorder %s20_s15, %s1785_s19  ;;  %p1790_p4 = scmp.lt.s32.totalorder %s20_s15, %s20_s15 }
  0x10   :  { %p1791_p5 = scmp.lt.s32.totalorder %s1785_s19, %s1785_s19 }
  0x12   :  { %p1792_p6 = por %p1791_p5, %p1790_p4 }
  0x14   :  { %p1793_p7 = pnand %p1792_p6, %p1786_p3 }
  0x16   :  { %1796 = shalt.err (!%p1793_p7)  }
  0x17   :  { %s2198_s20 = smov [#allocation5]   ;;  %s1797_s0 = scalar_lea.vmem %s24_s18, 16 }
  0x18   :  { %22 = dma.vmem_to_smem %s20_s15, 16, %s2198_s20, [#allocation3] }
  0x19   :  { %p1798_p8 = scmp.ne.s32.totalorder %s24_s18, %s1797_s0  ;;  %p1802_p9 = scmp.lt.s32.totalorder %s24_s18, %s24_s18 }
  0x1a   :  { %p1803_p10 = scmp.lt.s32.totalorder %s1797_s0, %s1797_s0 }
  0x1c   :  { %p1804_p11 = por %p1803_p10, %p1802_p9 }
  0x1e   :  { %p1805_p12 = pnand %p1804_p11, %p1798_p8 }
  0x20   :  { %1808 = shalt.err (!%p1805_p12)  }
  0x21   :  { %s2199_s1 = smov [#allocation6]  }
  0x22   :  { %26 = dma.vmem_to_smem %s24_s18, 16, %s2199_s1, [#allocation3] }
  0x23   :  { %2079 = dma.done.wait [#allocation3], 48 }
  0x24   :  { %2080 = vsyncadd [#allocation3], 4294967248 }
  0x25   :  { %28 = sfence }
  0x26   :  { %29 = vsyncpa [#allocation8], 0 }
  0x27   :  { %31 = vsyncpa [#allocation8 + $0x1], 0 }
  0x28   :  { %32 = vsyncpa [#allocation11], 0 }
  0x29   :  { %34 = vsyncpa [#allocation11 + $0x1], 0 }
  0x2a   :  { %35 = vsyncpa [#allocation14], 0 }
  0x2b   :  { %37 = vsyncpa [#allocation14 + $0x1], 0 }
  0x2c   :  { %38 = vsyncpa [#allocation9], 0 }
  0x2d   :  { %40 = vsyncpa [#allocation9 + $0x1], 0  ;;  %s2295_s2 = smov 0   ;;  %s2297_s21 = smov 0  }
  0x2e   :  { %s2299_s22 = smov 0   ;;  %s2301_s23 = smov 0  }
  0x2f   :  { %s2303_s24 = smov 0   ;;  %s2305_s25 = smov 0  }
  0x30   :  { %s2307_s26 = smov 0   ;;  %s2309_s27 = smov 0  }
  0x31   :  { %s2311_s28 = smov 0   ;;  %s2313_s29 = smov 0  }
  0x32   :  { %s2315_s30 = smov 0   ;;  %s2317_s13 = smov 0  }
  0x33   :  { %s2319_s14 = smov 0   ;;  %s2321_s15 = smov 0  }
  0x34   :  { %s2323_s16 = smov 0   ;;  %s2325_s17 = smov 0  }
  0x35   :  { %s2327_s18 = smov 0   ;;  %s2329_s19 = smov 0  }
  0x36   :  { %s2331_s20 = smov 0   ;;  %s2333_s0 = smov 0  }
  0x37   :  { %s2335_s1 = smov 0   ;;  %s2337_s12 = smov 0  }
  0x38   :  { %s2339_s11 = smov 0  }
  0x39 LB: > { %3267 = sst [smem:[#allocation36_spill]] %s2107_s2  ;;  %s2409_s10 = sadd.s32 4294967295, %s2195_s11   ;;  %s2195_s11 = sphi %s2339_s11, %s46_s11   ;;  %s2191_s12 = sphi %s2337_s12, %s3421_s12   ;;  %s2187_s1 = sphi %s2335_s1, %s3411_s1   ;;  %s2183_s0 = sphi %s2333_s0, %s3410_s0   ;;  %s2179_s20 = sphi %s2331_s20, %s3420_s20   ;;  %s2175_s19 = sphi %s2329_s19, %s3408_s19   ;;  %s2171_s18 = sphi %s2327_s18, %s3419_s18   ;;  %s2167_s17 = sphi %s2325_s17, %s3418_s17   ;;  %s2163_s16 = sphi %s2323_s16, %s3417_s16   ;;  %s2159_s15 = sphi %s2321_s15, %s3405_s15   ;;  %s2155_s14 = sphi %s2319_s14, %s3404_s14   ;;  %s2151_s13 = sphi %s2317_s13, %s3403_s13   ;;  %s2147_s30 = sphi %s2315_s30, %s3416_s30   ;;  %s2143_s29 = sphi %s2313_s29, %s3415_s29   ;;  %s2139_s28 = sphi %s2311_s28, %s3401_s28   ;;  %s2135_s27 = sphi %s2309_s27, %s3400_s27   ;;  %s2131_s26 = sphi %s2307_s26, %s3399_s26   ;;  %s2127_s25 = sphi %s2305_s25, %s3412_s25   ;;  %s2123_s24 = sphi %s2303_s24, %s3398_s24   ;;  %s2119_s23 = sphi %s2301_s23, %s3397_s23   ;;  %s2115_s22 = sphi %s2299_s22, %s3396_s22   ;;  %s2111_s21 = sphi %s2297_s21, %s3395_s21   ;;  %s2107_s2 = sphi %s2295_s2, %s3394_s2  }
  0x3a   : > { %3268 = sst [smem:[#allocation37_spill]] %s2111_s21  ;;  %s1381_s9 = sadd.s32 4294967294, %s2195_s11  }
  0x3b   : > { %3269 = sst [smem:[#allocation38_spill]] %s2115_s22  ;;  %s55_s6 = sadd.s32 1, %s2187_s1 }
  0x3c   : > { %3270 = sst [smem:[#allocation39_spill]] %s2119_s23  ;;  %p56_p13 = scmp.ge.s32.totalorder %s55_s6, 2 }
  0x3d   : > { %3271 = sst [smem:[#allocation40_spill]] %s2123_s24  ;;  %p3233_p0 = scmp.eq.s32.totalorder %s2195_s11, 0 }
  0x3e   : > { %3272 = sst [smem:[#allocation41_spill]] %s2127_s25  ;;  %s3423_s6 = smov (%p56_p13, %s55_s6), 0 }
  0x3f   : > { %3273 = sst [smem:[#allocation42_spill]] %s2135_s27  ;;  %p3232_p1 = scmp.eq.s32.totalorder %s2409_s10, 0 }
  0x40   : > { %3274 = sst [smem:[#allocation43_spill]] %s2139_s28  ;;  %s103_s23 = sadd.s32 1, %s2163_s16 }
  0x41   : > { %3275 = sst [smem:[#allocation44_spill]] %s2143_s29  ;;  %p110_p3 = scmp.ne.s32.totalorder %s2163_s16, %s2159_s15 }
  0x42   : > { %3276 = sst [smem:[#allocation45_spill]] %s2151_s13  ;;  %p116_p4 = scmp.ne.s32.totalorder %s2159_s15, %s2155_s14 }
  0x43   : > { %3277 = sst [smem:[#allocation46_spill]] %s2159_s15  ;;  %p2432_p5 = por %p110_p3, %p3233_p0 }
  0x44   : > { %3278 = sst [smem:[#allocation47_spill]] %s2163_s16  ;;  %p2438_p6 = por %p116_p4, %p3232_p1 }
  0x45   : > { %3279 = sst [smem:[#allocation48_spill]] %s2175_s19  ;;  %s357_s3 = sadd.s32 1, %s2115_s22 }
  0x46   : > { %3280 = sst [smem:[#allocation49_spill]] %s2179_s20  ;;  %s58_s20 = sadd.s32 1, %s2191_s12 }
  0x47   : > { %3281 = sst [smem:[#allocation50_spill]] %s2183_s0  ;;  %s1382_s0 = sshll.u32 %s2191_s12, 1 }
  0x48   : > { %3282 = sst [smem:[#allocation51_spill]] %s2187_s1  ;;  %s2416_s8 = sadd.s32 %s2187_s1, %s1382_s0 }
  0x49   : > { %3283 = sst [smem:[#allocation52_spill]] %s2191_s12  ;;  %s3425_s20 = smov (!%p56_p13, %s58_s20), %s2191_s12 }
  0x4a   : > { %3284 = sst [smem:[#allocation53_spill]] %s3423_s6  ;;  %p60_p2 = scmp.ge.s32.totalorder %s3425_s20, 2 }
  0x4b   : > { %s96_s5 = sld [smem:[#allocation5 + %s2416_s8]]  ;;  %p367_p8 = scmp.ne.s32.totalorder %s2115_s22, %s2111_s21 }
  0x4c   : > { %s3427_s20 = smov (%p60_p2, %s3425_s20), 0  ;;  %p368_p9 = scmp.eq.s32.totalorder %s2409_s10, 3 }
  0x4d   : > { %3285 = sst [smem:[#allocation54_spill]] %s3427_s20  ;;  %s1383_s24 = sshll.u32 %s3427_s20, 1 }
  0x4e   : > { %s3287_s1 = scalar_select %p2438_p6, 1, 0 }
  0x4f   : > { %s354_s25 = ssub.s32 %s2191_s12, %s3427_s20  ;;  %s2446_s14 = sadd.s32 %s1383_s24, %s3423_s6 }
  0x50   : > { %p355_p7 = scmp.eq.s32.totalorder %s354_s25, 0  ;;  %s99_s15 = sld [smem:[#allocation5 + %s2446_s14]] }
  0x51   : > { %p373_p10 = scmp.ne.s32.totalorder %s2111_s21, %s2107_s2  ;;  %p374_p11 = scmp.eq.s32.totalorder %s1381_s9, 3 }
  0x52   : > { %s2451_s29 = scalar_select %p355_p7, %s2115_s22, %s357_s3  }
  0x53   : > { %p2458_p12 = por %p368_p9, %p367_p8  ;;  %p2462_p13 = por %p374_p11, %p373_p10 }
  0x54   : > { %3288 = sst [smem:[#allocation55_spill]] %s2451_s29  ;;  %p3231_p2 = scmp.lt.s32.totalorder %s2195_s11, 4 }
  0x55   : > { %s3289_s24 = scalar_select %p2458_p12, 1, 0 }
  0x56   : > { %s3291_s25 = scalar_select %p2462_p13, 1, 0 }
  0x57   : > { %3290 = sst [smem:[#allocation56_spill]] %s3289_s24  ;;  %s100_s3 = ssub.s32 %s96_s5, %s99_s15 }
  0x58   : > { %3292 = sst [smem:[#allocation57_spill]] %s3291_s25  ;;  %p101_p3 = scmp.eq.s32.totalorder %s100_s3, 0 }
  0x59   : > { %s418_s6 = sand.u32 1, %s2163_s16   ;;  %p2473_p4 = pnand %p3231_p2, %p2432_p5 }
  0x5a   : > { %s2478_s12 = scalar_select %p101_p3, %s2163_s16, %s103_s23  }
  0x5b   : > { %s1406_s29 = sshll.u32 %s418_s6, 4  ;;  %p1424_p7 = scmp.ge.s32.totalorder %s2195_s11, 1 }
  0x5c   : > { %3294 = sst [smem:[#allocation58_spill]] %s2478_s12  ;;  %s420_s3 = scalar_lea.vmem [#allocation10], %s1406_s29 }
  0x5d   : > { %s1524_s5 = scalar_select %p2432_p5, [#allocation5], [#allocation18] }
  0x5e   : > { %s1525_s15 = scalar_select %p2432_p5, %s2416_s8, 0 }
  0x5f   : > { %s3429_s5 = smov (!%p3231_p2, %s1524_s5), [#allocation24]  ;;  %s431_s20 = sshll.u32 %s420_s3, 4  ;;  %s2491_s20 = int_to_ptr.vmem [resolvable:$true] %s431_s20 }
  0x60   : > { %s3431_s15 = smov (!%p3231_p2, %s1525_s15), 0  ;;  %p565_p8 = scmp.lt.s32.totalorder %s2195_s11, 5 }
  0x61   : > { %s423_s6 = sld [smem:[%s3429_s5 + %s3431_s15]]  ;;  %s3297_s5 = sand.u32 1, %s2195_s11  }
  0x62   : > { %p2493_p9 = pnand %p1424_p7, %p565_p8  ;;  %s2498_s0 = sld [smem:[#allocation4 + %s2416_s8]] }
  0x63   : > { %s2501_s12 = sld [smem:[#allocation4 + %s2446_s14]]  ;;  %s2515_s15 = scalar_lea.sflag [#allocation11], %s3297_s5 }
  0x64   : > { %s3295_s23 = scalar_select %p2493_p9, 1, 0 }
  0x65   : > { %s3296_s4 = sld [smem:[#allocation65_spill]]  ;;  %p1811_p3 = pneg %p2473_p4 }
  0x67   : > { %s1452_s22 = sshll.u32 %s423_s6, 8 }
  0x6b   : > { %s2509_s3 = scalar_lea.hbm %s3296_s4, %s1452_s22  ;;  %s1814_s22 = scalar_lea.hbm %s3296_s4, 512 }
  0x6c   : > { %s1809_s2 = scalar_lea.hbm %s2509_s3, 256  ;;  %p1815_p2 = scmp.lt.u32.totalorder %s2509_s3, %s3296_s4 }
  0x6d   : > { %p1810_p11 = scmp.ne.s32.totalorder %s2509_s3, %s1809_s2  ;;  %p1816_p10 = scmp.lt.u32.totalorder %s1814_s22, %s1809_s2 }
  0x6e   : > { %p1818_p5 = scmp.lt.u32.totalorder %s1809_s2, %s2509_s3 }
  0x6f   : > { %p1812_p7 = pnand %p1811_p3, %p1810_p11  ;;  %p1817_p1 = por %p1816_p10, %p1815_p2 }
  0x71   : > { %p1813_p8 = pneg %p1812_p7  ;;  %p1819_p0 = por %p1818_p5, %p1817_p1 }
  0x73   : > { %p1820_p13 = pnand %p1819_p0, %p1813_p8 }
  0x75   : > { %1823 = shalt.err (!%p1820_p13)
}
  0x76   : > { %s1824_s5 = scalar_lea.vmem %s2491_s20, 256  ;;  %s2200_s6 = smov [#allocation10]  }
  0x77   : > { %p1825_p11 = scmp.ne.s32.totalorder %s2491_s20, %s1824_s5  ;;  %s1829_s25 = sshll.u32 %s2200_s6, 4  ;;  %s1830_s25 = int_to_ptr.vmem [resolvable:$false] %s1829_s25 }
  0x78   : > { %s1831_s16 = scalar_lea.vmem %s1830_s25, 512  ;;  %p1832_p6 = scmp.lt.s32.totalorder %s2491_s20, %s1830_s25 }
  0x79   : > { %p1827_p7 = pnand %p1825_p11, %p1811_p3  ;;  %p1833_p2 = scmp.lt.s32.totalorder %s1831_s16, %s1824_s5 }
  0x7b   : > { %p1828_p12 = pneg %p1827_p7  ;;  %p1834_p10 = por %p1833_p2, %p1832_p6 }
  0x7d   : > { %p1835_p1 = pnand %p1834_p10, %p1828_p12 }
  0x7f   : > { %1838 = shalt.err (!%p1835_p1)
}
  0x80   : > { %1555 = dma.hbm_to_vmem [thread:$0]  (!%p2473_p4), %s2509_s3, 256, %s2491_s20, %s2515_s15  }
  0x81   : > { %p3298_p0 = scmp.eq.s32.totalorder %s2195_s11, 0  ;;  %p3299_p6 = scmp.ne.s32.totalorder %s2139_s28, %s2135_s27 }
  0x82   : > { %p3301_p13 = scmp.eq.s32.totalorder %s2409_s10, 0  ;;  %p3302_p5 = scmp.ne.s32.totalorder %s2135_s27, %s2131_s26 }
  0x83   : > { %p2548_p12 = por %p3299_p6, %p3298_p0  ;;  %s483_s22 = sand.u32 1, %s2139_s28  }
  0x84   : > { %p2557_p3 = por %p3302_p5, %p3301_p13  ;;  %s200_s29 = ssub.s32 %s2498_s0, %s2501_s12 }
  0x85   : > { %s1416_s20 = sshll.u32 %s483_s22, 3  ;;  %p201_p4 = scmp.eq.s32.totalorder %s200_s29, 0 }
  0x86   : > { %s3303_s9 = scalar_select %p2557_p3, 1, 0 }
  0x87   : > { %s1532_s3 = scalar_select %p2548_p12, [#allocation4], [#allocation21] }
  0x88   : > { %3304 = sst [smem:[#allocation59_spill]] %s3303_s9  ;;  %s3305_s5 = sadd.s32 1, %s2139_s28 }
  0x89   : > { %s2569_s6 = scalar_select %p201_p4, %s2139_s28, %s3305_s5  }
  0x8a   : > { %s1533_s26 = scalar_select %p2548_p12, %s2416_s8, 0 }
  0x8b   : > { %3306 = sst [smem:[#allocation60_spill]] %s2569_s6  ;;  %p3307_p8 = scmp.lt.s32.totalorder %s2195_s11, 4 }
  0x8c   : > { %s485_s25 = scalar_lea.vmem [#allocation13], %s1416_s20  ;;  %s3311_s7 = sld [smem:[#allocation68_spill]] }
  0x8d   : > { %s3433_s3 = smov (!%p3307_p8, %s1532_s3), [#allocation27]  ;;  %p3308_p11 = pmov %p3307_p8 }
  0x8e   : > { %s496_s16 = sshll.u32 %s485_s25, 4  ;;  %p3309_p7 = pmov %p3307_p8  ;;  %s2586_s16 = int_to_ptr.vmem [resolvable:$true] %s496_s16 }
  0x8f   : > { %s3435_s26 = smov (!%p3308_p11, %s1533_s26), 0  ;;  %s2594_s2 = sld [smem:[#allocation4 + %s2416_s8]] }
  0x90   : > { %p2582_p2 = pnand %p3309_p7, %p2548_p12  ;;  %s488_s0 = sld [smem:[%s3433_s3 + %s3435_s26]] }
  0x91   : > { %s3312_s20 = sand.u32 1, %s2195_s11  }
  0x92   : > { %s2598_s25 = scalar_lea.sflag [#allocation14], %s3312_s20  ;;  %p1841_p1 = pneg %p2582_p2 }
  0x96   : > { %s1454_s22 = sshll.u32 %s488_s0, 7  ;;  %s1844_s0 = scalar_lea.hbm %s3311_s7, 256 }
  0x97   : > { %s2591_s4 = scalar_lea.hbm %s3311_s7, %s1454_s22 }
  0x98   : > { %s1839_s6 = scalar_lea.hbm %s2591_s4, 128  ;;  %p1845_p12 = scmp.lt.u32.totalorder %s2591_s4, %s3311_s7 }
  0x99   : > { %p1840_p10 = scmp.ne.s32.totalorder %s2591_s4, %s1839_s6  ;;  %p1846_p13 = scmp.lt.u32.totalorder %s1844_s0, %s1839_s6 }
  0x9a   : > { %p1848_p4 = scmp.lt.u32.totalorder %s1839_s6, %s2591_s4 }
  0x9b   : > { %p1842_p0 = pnand %p1841_p1, %p1840_p10  ;;  %p1847_p5 = por %p1846_p13, %p1845_p12 }
  0x9d   : > { %p1843_p6 = pneg %p1842_p0  ;;  %p1849_p8 = por %p1848_p4, %p1847_p5 }
  0x9f   : > { %p1850_p11 = pnand %p1849_p8, %p1843_p6 }
  0xa1   : > { %1853 = shalt.err (!%p1850_p11)
}
  0xa2   : > { %s1854_s5 = scalar_lea.vmem %s2586_s16, 128  ;;  %s2201_s20 = smov [#allocation13]  }
  0xa3   : > { %p1855_p7 = scmp.ne.s32.totalorder %s2586_s16, %s1854_s5  ;;  %s1859_s3 = sshll.u32 %s2201_s20, 4  ;;  %s1860_s3 = int_to_ptr.vmem [resolvable:$false] %s1859_s3 }
  0xa4   : > { %s1861_s26 = scalar_lea.vmem %s1860_s3, 256  ;;  %p1862_p3 = scmp.lt.s32.totalorder %s2586_s16, %s1860_s3 }
  0xa5   : > { %p1857_p10 = pnand %p1855_p7, %p1841_p1  ;;  %p1863_p12 = scmp.lt.s32.totalorder %s1861_s26, %s1854_s5 }
  0xa7   : > { %p1858_p0 = pneg %p1857_p10  ;;  %p1864_p13 = por %p1863_p12, %p1862_p3 }
  0xa9   : > { %p1865_p5 = pnand %p1864_p13, %p1858_p0 }
  0xab   : > { %1868 = shalt.err (!%p1865_p5)
}
  0xac   : > { %1567 = dma.hbm_to_vmem [thread:$0]  (!%p2582_p2), %s2591_s4, 128, %s2586_s16, %s2598_s25  }
  0xad   : > { %s67_s6 = sld [smem:[#allocation4 + %s2446_s14]]  ;;  %s71_s0 = sadd.s32 1, %s2175_s19 }
  0xae   : > { %p78_p3 = scmp.ne.s32.totalorder %s2175_s19, %s2171_s18  ;;  %p84_p1 = scmp.ne.s32.totalorder %s2171_s18, %s2167_s17 }
  0xaf   : > { %s394_s12 = sand.u32 1, %s2175_s19   ;;  %p3313_p6 = scmp.eq.s32.totalorder %s2195_s11, 0 }
  0xb0   : > { %p3315_p8 = scmp.eq.s32.totalorder %s2409_s10, 0  ;;  %s1402_s16 = sshll.u32 %s394_s12, 4 }
  0xb1   : > { %p2635_p4 = por %p3313_p6, %p78_p3  ;;  %p3318_p11 = scmp.lt.s32.totalorder %s2195_s11, 4 }
  0xb2   : > { %p2641_p2 = por %p3315_p8, %p84_p1  ;;  %s398_s5 = scalar_lea.vmem [#allocation7], %s1402_s16 }
  0xb3   : > { %p2649_p7 = pnand %p3318_p11, %p2635_p4  ;;  %s68_s29 = ssub.s32 %s2594_s2, %s67_s6 }
  0xb4   : > { %s3316_s4 = scalar_select %p2641_p2, 1, 0 }
  0xb5   : > { %s3320_s20 = sld [smem:[#allocation44_spill]]  ;;  %s409_s3 = sshll.u32 %s398_s5, 4  ;;  %s2654_s3 = int_to_ptr.vmem [resolvable:$true] %s409_s3 }
  0xb6   : > { %3317 = sst [smem:[#allocation61_spill]] %s3316_s4  ;;  %p69_p10 = scmp.eq.s32.totalorder %s68_s29, 0 }
  0xb7   : > { %s1521_s26 = scalar_select %p2635_p4, [#allocation4], [#allocation17] }
  0xb8   : > { %s2659_s7 = scalar_select %p69_p10, %s2175_s19, %s71_s0  }
  0xb9   : > { %s1522_s28 = scalar_select %p2635_p4, %s2416_s8, 0 }
  0xba   : > { %3321 = sst [smem:[#allocation62_spill]] %s2659_s7  ;;  %p3322_p0 = pmov %p3318_p11 }
  0xbb   : > { %s2669_s6 = sld [smem:[#allocation4 + %s2416_s8]]  ;;  %p146_p13 = scmp.ne.s32.totalorder %s2151_s13, %s2147_s30 }
  0xbc   : > { %s3437_s26 = smov (!%p3322_p0, %s1521_s26), [#allocation23]  ;;  %p3323_p12 = pmov %p3322_p0 }
  0xbd   : > { %s2672_s16 = sld [smem:[#allocation5 + %s2416_s8]]  ;;  %s440_s22 = sand.u32 1, %s2151_s13  }
  0xbe   : > { %s3439_s28 = smov (!%p3323_p12, %s1522_s28), 0  ;;  %s2675_s29 = sld [smem:[#allocation4 + %s2446_s14]] }
  0xbf   : > { %s401_s2 = sld [smem:[%s3437_s26 + %s3439_s28]]  ;;  %p3326_p3 = pmov %p3313_p6 }
  0xc0   : > { %s2678_s5 = sld [smem:[#allocation5 + %s2446_s14]]  ;;  %s395_s26 = scalar_lea.sflag [#allocation8], %s394_s12 }
  0xc1   : > { %s3324_s21 = sld [smem:[#allocation64_spill]]  ;;  %p2693_p1 = por %p146_p13, %p3326_p3 }
  0xc2   : > { %p1871_p4 = pneg %p2649_p7 }
  0xc5   : > { %s1451_s0 = sshll.u32 %s401_s2, 8 }
  0xc7   : > { %s3325_s9 = smov %s3324_s21  ;;  %s2689_s27 = scalar_lea.hbm %s3324_s21, %s1451_s0 }
  0xc8   : > { %s1869_s24 = scalar_lea.hbm %s2689_s27, 256  ;;  %s1874_s19 = scalar_lea.hbm %s3325_s9, 512 }
  0xc9   : > { %p1870_p6 = scmp.ne.s32.totalorder %s2689_s27, %s1869_s24  ;;  %p1875_p10 = scmp.lt.u32.totalorder %s2689_s27, %s3325_s9 }
  0xca   : > { %p1876_p0 = scmp.lt.u32.totalorder %s1874_s19, %s1869_s24  ;;  %p1878_p13 = scmp.lt.u32.totalorder %s1869_s24, %s2689_s27 }
  0xcb   : > { %p1872_p8 = pnand %p1871_p4, %p1870_p6 }
  0xcc   : > { %p1877_p12 = por %p1876_p0, %p1875_p10 }
  0xcd   : > { %p1873_p11 = pneg %p1872_p8 }
  0xce   : > { %p1879_p3 = por %p1878_p13, %p1877_p12 }
  0xd0   : > { %p1880_p5 = pnand %p1879_p3, %p1873_p11 }
  0xd2   : > { %1883 = shalt.err (!%p1880_p5)
}
  0xd3   : > { %s1884_s12 = scalar_lea.vmem %s2654_s3, 256  ;;  %s2202_s7 = smov [#allocation7]  }
  0xd4   : > { %p1885_p6 = scmp.ne.s32.totalorder %s2654_s3, %s1884_s12  ;;  %s1889_s21 = sshll.u32 %s2202_s7, 4  ;;  %s1890_s21 = int_to_ptr.vmem [resolvable:$false] %s1889_s21 }
  0xd5   : > { %s1891_s2 = scalar_lea.vmem %s1890_s21, 512  ;;  %p1892_p9 = scmp.lt.s32.totalorder %s2654_s3, %s1890_s21 }
  0xd6   : > { %p1887_p8 = pnand %p1885_p6, %p1871_p4  ;;  %p1893_p10 = scmp.lt.s32.totalorder %s1891_s2, %s1884_s12 }
  0xd8   : > { %p1888_p2 = pneg %p1887_p8  ;;  %p1894_p0 = por %p1893_p10, %p1892_p9 }
  0xda   : > { %p1895_p12 = pnand %p1894_p0, %p1888_p2 }
  0xdc   : > { %1898 = shalt.err (!%p1895_p12)
}
  0xdd   : > { %1550 = dma.hbm_to_vmem [thread:$0]  (!%p2649_p7), %s2689_s27, 256, %s2654_s3, %s395_s26  }
  0xde   : > { %s134_s24 = ssub.s32 %s2669_s6, %s2675_s29  ;;  %p3328_p9 = scmp.eq.s32.totalorder %s2409_s10, 0 }
  0xdf   : > { %p3329_p2 = scmp.ne.s32.totalorder %s2147_s30, %s3320_s20  ;;  %s135_s19 = ssub.s32 %s2672_s16, %s2678_s5 }
  0xe0   : > { %s1410_s0 = sshll.u32 %s440_s22, 9  ;;  %s136_s12 = sor.u32 %s135_s19, %s134_s24 }
  0xe1   : > { %p2729_p5 = por %p3329_p2, %p3328_p9  ;;  %p137_p4 = scmp.eq.s32.totalorder %s136_s12, 0 }
  0xe2   : > { %s442_s7 = scalar_lea.vmem [#allocation12], %s1410_s0  ;;  %s3332_s3 = sadd.s32 1, %s2151_s13 }
  0xe3   : > { %s3330_s17 = scalar_select %p2729_p5, 1, 0 }
  0xe4   : > { %s456_s21 = sshll.u32 %s442_s7, 4  ;;  %s3333_s20 = sld [smem:[#allocation41_spill]]  ;;  %s2753_s21 = int_to_ptr.vmem [resolvable:$true] %s456_s21 }
  0xe5   : > { %3331 = sst [smem:[#allocation44_spill]] %s3330_s17  ;;  %p3335_p7 = scmp.lt.s32.totalorder %s2195_s11, 4 }
  0xe6   : > { %s1527_s27 = scalar_select %p2693_p1, [#allocation4], [#allocation19] }
  0xe7   : > { %s2742_s6 = scalar_select %p137_p4, %s2151_s13, %s3332_s3  }
  0xe8   : > { %s1528_s29 = scalar_select %p2693_p1, %s2416_s8, 0 }
  0xe9   : > { %3334 = sst [smem:[#allocation63_spill]] %s2742_s6  ;;  %s3441_s27 = smov (!%p3335_p7, %s1527_s27), [#allocation25] }
  0xea   : > { %s3336_s26 = sld [smem:[#allocation40_spill]]  ;;  %p3337_p11 = pmov %p3335_p7 }
  0xeb   : > { %s3338_s16 = sld [smem:[#allocation39_spill]]  ;;  %p3339_p13 = pmov %p3335_p7 }
  0xec   : > { %s3443_s29 = smov (!%p3337_p11, %s1528_s29), 0  ;;  %p3340_p3 = pmov %p3335_p7 }
  0xed   : > { %s1529_s5 = scalar_select %p2693_p1, [#allocation5], [#allocation20] }
  0xee   : > { %s445_s22 = sld [smem:[%s3441_s27 + %s3443_s29]]  ;;  %p2761_p6 = pnand %p3340_p3, %p2693_p1 }
  0xef   : > { %s3445_s5 = smov (!%p3339_p13, %s1529_s5), [#allocation26]  ;;  %s2766_s0 = sld [smem:[#allocation4 + %s2416_s8]] }
  0xf0   : > { %s446_s24 = sld [smem:[%s3445_s5 + %s3443_s29]]  ;;  %s235_s3 = sadd.s32 1, %s3333_s20 }
  0xf1   : > { %s2769_s7 = sld [smem:[#allocation4 + %s2446_s14]]  ;;  %p1901_p0 = pneg %p2761_p6 }
  0xf2   : > { %s3342_s13 = sld [smem:[#allocation66_spill]] }
  0xf4   : > { %s1453_s19 = sshll.u32 %s445_s22, 7 }
  0xf6   : > { %s1413_s12 = sshll.u32 %s446_s24, 1 }
  0xf7   : > { %s453_s27 = sadd.s32 %s1453_s19, %s1413_s12 }
  0xf8   : > { %s1415_s9 = sshll.u32 %s453_s27, 7  ;;  %s3343_s4 = smov %s3342_s13 }
  0xf9   : > { %s2777_s17 = scalar_lea.hbm %s3342_s13, %s1415_s9  ;;  %s1904_s22 = scalar_lea.hbm %s3343_s4, 32768 }
  0xfa   : > { %s1899_s29 = scalar_lea.hbm %s2777_s17, 8192  ;;  %p1905_p2 = scmp.lt.u32.totalorder %s2777_s17, %s3343_s4 }
  0xfb   : > { %p1900_p10 = scmp.ne.s32.totalorder %s2777_s17, %s1899_s29  ;;  %p1906_p4 = scmp.lt.u32.totalorder %s1904_s22, %s1899_s29 }
  0xfc   : > { %p1908_p11 = scmp.lt.u32.totalorder %s1899_s29, %s2777_s17 }
  0xfd   : > { %p1902_p12 = pnand %p1901_p0, %p1900_p10  ;;  %p1907_p7 = por %p1906_p4, %p1905_p2 }
  0xff   : > { %p1903_p9 = pneg %p1902_p12  ;;  %p1909_p13 = por %p1908_p11, %p1907_p7 }
 0x101   : > { %p1910_p3 = pnand %p1909_p13, %p1903_p9 }
 0x103   : > { %1913 = shalt.err (!%p1910_p3)
}
 0x104   : > { %s1914_s9 = scalar_lea.vmem %s2753_s21, 8192  ;;  %s2203_s24 = smov [#allocation12]  }
 0x105   : > { %p1915_p10 = scmp.ne.s32.totalorder %s2753_s21, %s1914_s9  ;;  %s1919_s19 = sshll.u32 %s2203_s24, 4  ;;  %s1920_s19 = int_to_ptr.vmem [resolvable:$false] %s1919_s19 }
 0x106   : > { %s1921_s12 = scalar_lea.vmem %s1920_s19, 16384  ;;  %p1922_p8 = scmp.lt.s32.totalorder %s2753_s21, %s1920_s19 }
 0x107   : > { %p1917_p12 = pnand %p1915_p10, %p1901_p0  ;;  %p1923_p2 = scmp.lt.s32.totalorder %s1921_s12, %s1914_s9 }
 0x109   : > { %p1918_p1 = pneg %p1917_p12  ;;  %p1924_p4 = por %p1923_p2, %p1922_p8 }
 0x10b   : > { %p1925_p7 = pnand %p1924_p4, %p1918_p1 }
 0x10d   : > { %1928 = shalt.err (!%p1925_p7)
}
 0x10e   : > { %s2204_s27 = smov 512   ;;  %s2205_s28 = smov 256  }
 0x10f   : > { %s2206_s29 = smov 16   ;;  %p3344_p8 = scmp.eq.s32.totalorder %s2195_s11, 0 }
 0x110   : > { %1562 = dma.hbm_to_vmem [thread:$0]  (!%p2761_p6), %s2777_s17, 8192, %s2753_s21, %s2515_s15, %s2204_s27, %s2205_s28, %s2206_s29  }
 0x111   : > { %p3345_p1 = scmp.ne.s32.totalorder %s3333_s20, %s3336_s26  ;;  %p3346_p9 = scmp.eq.s32.totalorder %s2409_s10, 0 }
 0x112   : > { %p3347_p11 = scmp.ne.s32.totalorder %s3336_s26, %s3338_s16  ;;  %s232_s5 = ssub.s32 %s2766_s0, %s2769_s7 }
 0x113   : > { %p244_p0 = por %p3345_p1, %p3344_p8  ;;  %s505_s22 = sand.u32 1, %s3333_s20  }
 0x114   : > { %p2817_p13 = por %p3347_p11, %p3346_p9  ;;  %p233_p3 = scmp.eq.s32.totalorder %s232_s5, 0 }
 0x115   : > { %s1420_s6 = sshll.u32 %s505_s22, 3  ;;  %p3349_p10 = scmp.lt.s32.totalorder %s2195_s11, 4 }
 0x116   : > { %s3348_s14 = scalar_select %p2817_p13, 1, 0 }
 0x117   : > { %p2826_p12 = pnand %p3349_p10, %p244_p0  ;;  %s3447_s20 = smov (!%p233_p3, %s3333_s20), %s235_s3 }
 0x118   : > { %s1535_s15 = scalar_select %p244_p0, [#allocation4], [#allocation22] }
 0x119   : > { %s3449_s8 = smov (!%p244_p0, %s2416_s8), 0  ;;  %p3351_p6 = pmov %p3349_p10 }
 0x11a   : > { %s507_s21 = scalar_lea.vmem [#allocation15], %s1420_s6  ;;  %s3353_s7 = sld [smem:[#allocation69_spill]] }
 0x11b   : > { %s3451_s15 = smov (!%p3351_p6, %s1535_s15), [#allocation28]  ;;  %p3352_p2 = pmov %p3351_p6 }
 0x11c   : > { %s518_s26 = sshll.u32 %s507_s21, 4  ;;  %p1931_p7 = pneg %p2826_p12  ;;  %s2840_s26 = int_to_ptr.vmem [resolvable:$true] %s518_s26 }
 0x11d   : > { %s3453_s8 = smov (!%p3352_p2, %s3449_s8), 0 }
 0x11e   : > { %s510_s17 = sld [smem:[%s3451_s15 + %s3453_s8]] }
 0x120   : > { %s1934_s8 = scalar_lea.hbm %s3353_s7, 256 }
 0x124   : > { %s1455_s16 = sshll.u32 %s510_s17, 7 }
 0x125   : > { %s516_s9 = scalar_lea.hbm %s3353_s7, %s1455_s16 }
 0x126   : > { %s1929_s24 = scalar_lea.hbm %s516_s9, 128  ;;  %p1935_p0 = scmp.lt.u32.totalorder %s516_s9, %s3353_s7 }
 0x127   : > { %p1930_p4 = scmp.ne.s32.totalorder %s516_s9, %s1929_s24  ;;  %p1936_p9 = scmp.lt.u32.totalorder %s1934_s8, %s1929_s24 }
 0x128   : > { %p1938_p3 = scmp.lt.u32.totalorder %s1929_s24, %s516_s9 }
 0x129   : > { %p1932_p8 = pnand %p1931_p7, %p1930_p4  ;;  %p1937_p11 = por %p1936_p9, %p1935_p0 }
 0x12b   : > { %p1933_p1 = pneg %p1932_p8  ;;  %p1939_p10 = por %p1938_p3, %p1937_p11 }
 0x12d   : > { %p1940_p6 = pnand %p1939_p10, %p1933_p1 }
 0x12f   : > { %1943 = shalt.err (!%p1940_p6)
}
 0x130   : > { %s1944_s28 = scalar_lea.vmem %s2840_s26, 128  ;;  %s2207_s29 = smov [#allocation15]  }
 0x131   : > { %p1945_p2 = scmp.ne.s32.totalorder %s2840_s26, %s1944_s28  ;;  %s1949_s5 = sshll.u32 %s2207_s29, 4  ;;  %s1950_s5 = int_to_ptr.vmem [resolvable:$false] %s1949_s5 }
 0x132   : > { %s1951_s22 = scalar_lea.vmem %s1950_s5, 256  ;;  %p1952_p13 = scmp.lt.s32.totalorder %s2840_s26, %s1950_s5 }
 0x133   : > { %p1947_p4 = pnand %p1945_p2, %p1931_p7  ;;  %p1953_p0 = scmp.lt.s32.totalorder %s1951_s22, %s1944_s28 }
 0x135   : > { %p1948_p8 = pneg %p1947_p4  ;;  %p1954_p9 = por %p1953_p0, %p1952_p13 }
 0x137   : > { %p1955_p11 = pnand %p1954_p9, %p1948_p8 }
 0x139   : > { %1958 = shalt.err (!%p1955_p11)
}
 0x13a   : > { %1572 = dma.hbm_to_vmem [thread:$0]  (!%p2826_p12), %s516_s9, 128, %s2840_s26, %s2598_s25  }
 0x13b   : > { %p3354_p1 = scmp.ne.s32.totalorder %s3295_s23, 0 }
 0x13c   : > { %s3355_s6 = sld [smem:[#allocation61_spill]] (!%p3354_p1)  ;;  %s571_s15 = sand.u32 (!%p3354_p1), 1, %s2171_s18  }
 0x13d   : > { %569 = sbr.rel (%p3354_p1) target bundleno = 763 (0x2fb), region = 56  ;;  %s1425_s17 = sshll.u32 (!%p3354_p1), %s571_s15, 4 }
 0x13e   : > { %s572_s21 = scalar_lea.sflag (!%p3354_p1), [#allocation8], %s571_s15  ;;  %s2869_s16 = scalar_lea.vmem (!%p3354_p1), [#allocation7], %s1425_s17 }
 0x142   : > { %p3356_p7 = scmp.ne.s32.totalorder (!%p3354_p1), %s3355_s6, 0 }
 0x144   : > { %2082 = dma.done.wait (%p3356_p7), %s572_s21, 256  }
 0x145   : > { %2084 = vsyncadd (%p3356_p7), %s572_s21, 4294967040  ;;  %s3357_s13 = sld [smem:[#allocation46_spill]]  ;;  %s580_s2 = sand.u32 1, %s2409_s10  }
 0x146   : > { %s581_s23 = scalar_lea.sflag [#allocation11], %s580_s2  ;;  %p3358_p13 = scmp.ne.s32.totalorder %s3287_s1, 0 }
 0x14b   : > { %s582_s25 = sand.u32 1, %s3357_s13  }
 0x14c   : > { %s2877_s26 = sshll.u32 %s582_s25, 4 }
 0x14d   : > { %2086 = dma.done.wait (%p3358_p13), %s581_s23, 256  }
 0x14e   : > { %2088 = vsyncadd (%p3358_p13), %s581_s23, 4294967040  ;;  %s591_s24 = sand.u32 1, %s2147_s30  }
 0x14f   : > { %s1427_s3 = sshll.u32 %s591_s24, 9 }
 0x150   : > { %s2885_s19 = scalar_lea.vmem [#allocation12], %s1427_s3 }
 0x151   : > { %2090 = dma.done.wait (%p2729_p5), %s581_s23, 8192  }
 0x152   : > { %2092 = vsyncadd (%p2729_p5), %s581_s23, 4294959104  ;;  %s3360_s10 = sld [smem:[#allocation42_spill]]  ;;  %s3361_s8 = sld [smem:[#allocation59_spill]] }
 0x153   : > { %s599_s28 = scalar_lea.sflag [#allocation14], %s580_s2 }
 0x158   : > { %s600_s12 = sand.u32 1, %s3360_s10   ;;  %p3362_p12 = scmp.ne.s32.totalorder %s3361_s8, 0 }
 0x159   : > { %s2892_s27 = sshll.u32 %s600_s12, 3 }
 0x15a   : > { %2094 = dma.done.wait (%p3362_p12), %s599_s28, 128  }
 0x15b   : > { %2096 = vsyncadd (%p3362_p12), %s599_s28, 4294967168  ;;  %s3363_s29 = sld [smem:[#allocation40_spill]]  ;;  %p3364_p5 = scmp.ne.s32.totalorder %s3348_s14, 0 }
 0x161   : > { %s609_s5 = sand.u32 1, %s3363_s29  }
 0x162   : > { %s2900_s22 = sshll.u32 %s609_s5, 3 }
 0x163   : > { %2098 = dma.done.wait (%p3364_p5), %s599_s28, 128  }
 0x164   : > { %2100 = vsyncadd (%p3364_p5), %s599_s28, 4294967168  ;;  %s3365_s15 = sld [smem:[#allocation50_spill]]  ;;  %s3366_s17 = sld [smem:[#allocation37_spill]] }
 0x165   : > { %s3367_s21 = sld [smem:[#allocation49_spill]]  ;;  %s3369_s0 = sld [smem:[#allocation70_spill]] }
 0x166   : > { %s3370_s4 = sld [smem:[#allocation71_spill]] }
 0x16a   : > { %s1431_s13 = sshll.u32 %s3365_s15, 1  ;;  %s3254_s2 = sand.u32 1, %s3366_s17  }
 0x16b   : > { %s2910_s25 = sadd.s32 %s3367_s21, %s1431_s13  ;;  %s1430_s23 = sshll.u32 %s3254_s2, 4 }
 0x16c   : > { %s711_s9 = sld [smem:[#allocation4 + %s2910_s25]]  ;;  %p1441_p4 = scmp.ne.s32.totalorder %s3367_s21, 0 }
 0x16d   : > { %s731_s24 = sld [smem:[#allocation4 + %s2910_s25]]  ;;  %v2208_v0 = vmov (!%p1441_p4), 0.0  }
 0x16e   : > { %s742_s3 = sld [smem:[#allocation4 + %s2910_s25]]  ;;  %770 = vst [vmem:[#allocation2] sm:$0x1f] (!%p1441_p4), %v2208_v0  ;;  %771 = vst [vmem:[#allocation2 + $0x8] sm:$0x1f] (!%p1441_p4), %v2208_v0 }
 0x16f   : > { %s753_s14 = sld [smem:[#allocation4 + %s2910_s25]] }
 0x170   : > { %s2919_s10 = sld [smem:[#allocation6 + %s2910_s25]] }
 0x171   : > { %s3368_s13 = sld [smem:[#allocation67_spill]] }
 0x172   : > { %s1432_s8 = sshll.u32 %s711_s9, 1 }
 0x173   : > { %s1435_s12 = sshll.u32 %s731_s24, 1  ;;  %p713_p3 = scmp.lt.s32.totalorder %s1432_s8, 3 }
 0x174   : > { %p733_p10 = scmp.lt.s32.totalorder %s1435_s12, 3  ;;  %s1437_s28 = sshll.u32 %s742_s3, 1 }
 0x175   : > { %s1439_s29 = sshll.u32 %s753_s14, 1  ;;  %s3455_s8 = smov (!%p713_p3, %s1432_s8), 3 }
 0x176   : > { %s3457_s12 = smov (!%p733_p10, %s1435_s12), 3  ;;  %s1433_s5 = sshll.u32 %s3455_s8, 2 }
 0x177   : > { %p744_p6 = scmp.lt.s32.totalorder %s1437_s28, 3  ;;  %s2926_s2 = scalar_lea.vmem %s3368_s13, %s1433_s5 }
 0x178   : > { %s735_s9 = scalar_lea.vmem %s3369_s0, %s3457_s12  ;;  %p755_p2 = scmp.lt.s32.totalorder %s1439_s29, 3 }
 0x179   : > { %s3459_s28 = smov (!%p744_p6, %s1437_s28), 3  ;;  %s765_s24 = scvt.s32.f32 %s2919_s10 }
 0x17a   : > { %s746_s7 = scalar_lea.vmem %s3370_s4, %s3459_s28  ;;  %s3461_s29 = smov (!%p755_p2, %s1439_s29), 3 }
 0x17b   : > { %s3371_s5 = sld [smem:[#allocation72_spill]]  ;;  %s2945_s13 = scalar_lea.vmem [#allocation16], %s1430_s23 }
 0x17c   : > { %769 = sbr.rel (%p1441_p4) target bundleno = 387 (0x183), region = 80  ;;  %772 = vst [vmem:[%s2945_s13] sm:$0xff] (!%p1441_p4), %v2208_v0  ;;  %773 = vst [vmem:[%s2945_s13 + $0x8] sm:$0xff] (!%p1441_p4), %v2208_v0 }
 0x181   : > { %s757_s17 = scalar_lea.vmem %s3371_s5, %s3461_s29 }
 0x183 PF: > { %v777_v1 = vld [vmem:[%s2885_s19 + $0x8] sm:$0xff]  ;;  %v779_v2 = vld [vmem:[%s2885_s19 + $0x18] sm:$0xff]  ;;  %v776_v3 = vld [vmem:[%s2885_s19] sm:$0xff]  ;;  %s924_s4 = sld [smem:[#allocation4 + %s2910_s25]]  ;;  %p927_p0 = scmp.ne.s32.totalorder %s2919_s10, 0 }
 0x184   : > { %v1457_v4 = vpack.c.bf16 %v779_v2, %v777_v1  ;;  %v778_v5 = vld [vmem:[%s2885_s19 + $0x10] sm:$0xff]  ;;  %v781_v6 = vld [vmem:[%s2885_s19 + $0x28] sm:$0xff]  ;;  %v783_v7 = vld [vmem:[%s2885_s19 + $0x38] sm:$0xff]  ;;  %s925_s0 = sld [smem:[#allocation5 + %s2910_s25]]  ;;  %s3373_s6 = scalar_lea.vmem [#allocation10], %s2877_s26 }
 0x185   : > { %v1459_v8 = vpack.c.bf16 %v778_v5, %v776_v3  ;;  %v1461_v9 = vpack.c.bf16 %v783_v7, %v781_v6  ;;  %v780_v10 = vld [vmem:[%s2885_s19 + $0x20] sm:$0xff]  ;;  %v782_v11 = vld [vmem:[%s2885_s19 + $0x30] sm:$0xff]  ;;  %v785_v12 = vld [vmem:[%s2885_s19 + $0x48] sm:$0xff]  ;;  %s3374_s21 = smov %s3373_s6 }
 0x186   : > { %1458 = vmatprep.subr.bf16.mxu0 %v1457_v4  ;;  %v787_v13 = vld [vmem:[%s2885_s19 + $0x58] sm:$0xff]  ;;  %v1463_v14 = vpack.c.bf16 %v782_v11, %v780_v10  ;;  %v784_v16 = vld [vmem:[%s2885_s19 + $0x40] sm:$0xff]  ;;  %v786_v17 = vld [vmem:[%s2885_s19 + $0x50] sm:$0xff] }
 0x187   : > { %1460 = vmatpush1.bf16.msra.mxu0 %v1459_v8  ;;  %v1465_v15 = vpack.c.bf16 %v787_v13, %v785_v12  ;;  %v789_v18 = vld [vmem:[%s2885_s19 + $0x68] sm:$0xff]  ;;  %v791_v19 = vld [vmem:[%s2885_s19 + $0x78] sm:$0xff]  ;;  %v1467_v20 = vpack.c.bf16 %v786_v17, %v784_v16  ;;  %v788_v22 = vld [vmem:[%s2885_s19 + $0x60] sm:$0xff] }
 0x188   : > { %1462 = vmatprep.subr.bf16.mxu0 %v1461_v9  ;;  %v1469_v21 = vpack.c.bf16 %v791_v19, %v789_v18  ;;  %v790_v23 = vld [vmem:[%s2885_s19 + $0x70] sm:$0xff]  ;;  %v793_v24 = vld [vmem:[%s2885_s19 + $0x88] sm:$0xff]  ;;  %v795_v25 = vld [vmem:[%s2885_s19 + $0x98] sm:$0xff] }
 0x189   : > { %v1471_v26 = vpack.c.bf16 %v790_v23, %v788_v22  ;;  %v1473_v27 = vpack.c.bf16 %v795_v25, %v793_v24  ;;  %v792_v28 = vld [vmem:[%s2885_s19 + $0x80] sm:$0xff]  ;;  %v794_v29 = vld [vmem:[%s2885_s19 + $0x90] sm:$0xff]  ;;  %v797_v30 = vld [vmem:[%s2885_s19 + $0xa8] sm:$0xff] }
 0x18a   : > { %v799_v31 = vld [vmem:[%s2885_s19 + $0xb8] sm:$0xff]  ;;  %v1475_v32 = vpack.c.bf16 %v794_v29, %v792_v28  ;;  %v796_v34 = vld [vmem:[%s2885_s19 + $0xa0] sm:$0xff]  ;;  %v798_v35 = vld [vmem:[%s2885_s19 + $0xb0] sm:$0xff]  ;;  %p926_p8 = scmp.eq.s32.totalorder %s924_s4, %s925_s0 }
 0x18b   : > { %1464 = vmatpush1.bf16.msra.mxu0 %v1463_v14  ;;  %v1477_v33 = vpack.c.bf16 %v799_v31, %v797_v30  ;;  %v801_v36 = vld [vmem:[%s2885_s19 + $0xc8] sm:$0xff]  ;;  %v803_v37 = vld [vmem:[%s2885_s19 + $0xd8] sm:$0xff]  ;;  %v1479_v38 = vpack.c.bf16 %v798_v35, %v796_v34  ;;  %v800_v40 = vld [vmem:[%s2885_s19 + $0xc0] sm:$0xff] }
 0x18c   : > { %1466 = vmatprep.subr.bf16.mxu0 %v1465_v15  ;;  %v1481_v39 = vpack.c.bf16 %v803_v37, %v801_v36  ;;  %v802_v41 = vld [vmem:[%s2885_s19 + $0xd0] sm:$0xff]  ;;  %v775_v42 = vld [vmem:[%s2869_s16 + $0x8] sm:$0x1f]  ;;  %v804_v47 = vld [vmem:[%s2885_s19 + $0xe0] sm:$0xff]  ;;  %p3019_p9 = pnand %p927_p0, %p926_p8 }
 0x18d   : > { %v805_v43 = vld [vmem:[%s2885_s19 + $0xe8] sm:$0xff]  ;;  %v807_v44 = vld [vmem:[%s2885_s19 + $0xf8] sm:$0xff]  ;;  %904 = vmatprep.mubr.f32.mxu0 %v775_v42  ;;  %v1483_v45 = vpack.c.bf16 %v802_v41, %v800_v40  ;;  %v806_v48 = vld [vmem:[%s2885_s19 + $0xf0] sm:$0xff]  ;;  %s3375_s26 = scalar_lea.vmem (!%p3019_p9), [#allocation13], %s2892_s27  ;;  %vm943_vm0 = vcmask (!%p3019_p9), 1043456  }
 0x18e   : > { %v1485_v46 = vpack.c.bf16 %v807_v44, %v805_v43  ;;  %v809_v49 = vld [vmem:[%s2885_s19 + $0x108] sm:$0xff]  ;;  %v811_v50 = vld [vmem:[%s2885_s19 + $0x118] sm:$0xff]  ;;  %v1487_v51 = vpack.c.bf16 %v806_v48, %v804_v47  ;;  %v808_v53 = vld [vmem:[%s2885_s19 + $0x100] sm:$0xff] }
 0x18f   : > { %1468 = vmatpush1.bf16.msra.mxu0 %v1467_v20  ;;  %v1489_v52 = vpack.c.bf16 %v811_v50, %v809_v49  ;;  %v810_v54 = vld [vmem:[%s2885_s19 + $0x110] sm:$0xff]  ;;  %v813_v55 = vld [vmem:[%s2885_s19 + $0x128] sm:$0xff]  ;;  %v815_v56 = vld [vmem:[%s2885_s19 + $0x138] sm:$0xff] }
 0x190   : > { %1470 = vmatprep.subr.bf16.mxu0 %v1469_v21  ;;  %v1491_v57 = vpack.c.bf16 %v810_v54, %v808_v53  ;;  %v1493_v58 = vpack.c.bf16 %v815_v56, %v813_v55  ;;  %v812_v59 = vld [vmem:[%s2885_s19 + $0x120] sm:$0xff]  ;;  %v814_v60 = vld [vmem:[%s2885_s19 + $0x130] sm:$0xff]  ;;  %v817_v61 = vld [vmem:[%s2885_s19 + $0x148] sm:$0xff]  ;;  %v962_v56 = vlaneseq (!%p3019_p9) }
 0x191   : > { %v819_v62 = vld [vmem:[%s2885_s19 + $0x158] sm:$0xff]  ;;  %v1495_v63 = vpack.c.bf16 %v814_v60, %v812_v59  ;;  %v816_v1 = vld [vmem:[%s2885_s19 + $0x140] sm:$0xff]  ;;  %v818_v2 = vld [vmem:[%s2885_s19 + $0x150] sm:$0xff] }
 0x192   : > { %v1497_v0 = vpack.c.bf16 %v819_v62, %v817_v61  ;;  %v821_v3 = vld [vmem:[%s2885_s19 + $0x168] sm:$0xff]  ;;  %v823_v4 = vld [vmem:[%s2885_s19 + $0x178] sm:$0xff]  ;;  %v1499_v5 = vpack.c.bf16 %v818_v2, %v816_v1  ;;  %v820_v7 = vld [vmem:[%s2885_s19 + $0x160] sm:$0xff]  ;;  %v3051_v1 = vshrl.u32 (!%p3019_p9), %v962_v56, 7  ;;  %vm3081_vm2 = vcmp.lt.s32.totalorder (!%p3019_p9), %v962_v56, 256 }
 0x193   : > { %1472 = vmatpush1.bf16.msra.mxu0 %v1471_v26  ;;  %v1501_v6 = vpack.c.bf16 %v823_v4, %v821_v3  ;;  %v822_v8 = vld [vmem:[%s2885_s19 + $0x170] sm:$0xff]  ;;  %v825_v9 = vld [vmem:[%s2885_s19 + $0x188] sm:$0xff]  ;;  %v827_v10 = vld [vmem:[%s2885_s19 + $0x198] sm:$0xff] }
 0x194   : > { %1474 = vmatprep.subr.bf16.mxu0 %v1473_v27  ;;  %v1503_v11 = vpack.c.bf16 %v822_v8, %v820_v7  ;;  %v1505_v12 = vpack.c.bf16 %v827_v10, %v825_v9  ;;  %v824_v13 = vld [vmem:[%s2885_s19 + $0x180] sm:$0xff]  ;;  %v826_v14 = vld [vmem:[%s2885_s19 + $0x190] sm:$0xff]  ;;  %v829_v15 = vld [vmem:[%s2885_s19 + $0x1a8] sm:$0xff] }
 0x195   : > { %v831_v16 = vld [vmem:[%s2885_s19 + $0x1b8] sm:$0xff]  ;;  %v1507_v17 = vpack.c.bf16 %v826_v14, %v824_v13  ;;  %v828_v19 = vld [vmem:[%s2885_s19 + $0x1a0] sm:$0xff]  ;;  %v830_v20 = vld [vmem:[%s2885_s19 + $0x1b0] sm:$0xff]  ;;  %v964_v13 = vsub.s32 (!%p3019_p9), 0, %v3051_v1  ;;  %v2209_v14 = vmov (!%p3019_p9), 1966171168  }
 0x196   : > { %v1509_v18 = vpack.c.bf16 %v831_v16, %v829_v15  ;;  %v833_v21 = vld [vmem:[%s2885_s19 + $0x1c8] sm:$0xff]  ;;  %v835_v22 = vld [vmem:[%s2885_s19 + $0x1d8] sm:$0xff]  ;;  %v1511_v23 = vpack.c.bf16 %v830_v20, %v828_v19  ;;  %v832_v25 = vld [vmem:[%s2885_s19 + $0x1c0] sm:$0xff]  ;;  %v978_v15 = vunpack.c.l.s4 (!%p3019_p9), %v2209_v14 }
 0x197   : > { %1476 = vmatpush1.bf16.msra.mxu0 %v1475_v32  ;;  %v1513_v24 = vpack.c.bf16 %v835_v22, %v833_v21  ;;  %v834_v26 = vld [vmem:[%s2885_s19 + $0x1d0] sm:$0xff]  ;;  %v837_v27 = vld [vmem:[%s2885_s19 + $0x1e8] sm:$0xff]  ;;  %v839_v28 = vld [vmem:[%s2885_s19 + $0x1f8] sm:$0xff] }
 0x198   : > { %1478 = vmatprep.subr.bf16.mxu0 %v1477_v33  ;;  %v1515_v29 = vpack.c.bf16 %v834_v26, %v832_v25  ;;  %v1517_v30 = vpack.c.bf16 %v839_v28, %v837_v27  ;;  %v836_v31 = vld [vmem:[%s2885_s19 + $0x1e0] sm:$0xff]  ;;  %v838_v32 = vld [vmem:[%s2885_s19 + $0x1f0] sm:$0xff]  ;;  %v912_v44 = vld [vmem:[#allocation2 + $0x8] sm:$0x1f]  ;;  %s3376_s19 = scalar_lea.vmem (!%p3019_p9), [#allocation15], %s2900_s22 }
 0x199   : > { %v1519_v33 = vpack.c.bf16 %v838_v32, %v836_v31  ;;  %v774_v34 = vld [vmem:[%s2869_s16] sm:$0x1f]  ;;  %v3032_v48 = vld [vmem:[%s2926_s2] sm:$0xff] (!%p3019_p9)  ;;  %v995_v59 = vld [vmem:[%s3376_s19] sm:$0xff] (!%p3019_p9) }
 0x19a   : > { %v913_v35 = vld [vmem:[%s3373_s6] sm:$0x1f]  ;;  %v1019_v53 = vsel (!%p3019_p9), %vm943_vm0, %v3032_v48, 0.0  ;;  %vm993_vm1 = vcmp.ne.f32.partialorder (!%p3019_p9), %v3032_v48, 0.0 }
 0x19b   : > { %1480 = vmatpush1.bf16.msra.mxu0 %v1479_v38  ;;  %v914_v36 = vld [vmem:[%s3374_s21 + $0x8] sm:$0x1f]  ;;  %v917_v38 = vstv %s765_s24  ;;  %v933_v49 = vld [vmem:[%s3375_s26] sm:$0xff] (!%p3019_p9)  ;;  %v1020_v61 = vrot.slane (!%p3019_p9), %v1019_v53, 4 }
 0x19c   : > { %1482 = vmatprep.subr.bf16.mxu0 %v1481_v39  ;;  %v911_v41 = vld [vmem:[#allocation2] sm:$0x1f]  ;;  %v934_v50 = vmul.f32 (!%p3019_p9), %v933_v49, %v3032_v48 }
 0x19f   : > { %1484 = vmatpush1.bf16.msra.mxu0 %v1483_v45 }
 0x1a0   : > { %1486 = vmatprep.subr.bf16.mxu0 %v1485_v46 }
 0x1a3   : > { %1488 = vmatpush1.bf16.msra.mxu0 %v1487_v51  ;;  %v1017_v51 = vcombine.high (!%p3019_p9), %v3032_v48, %v3032_v48 }
 0x1a4   : > { %1490 = vmatprep.subr.bf16.mxu0 %v1489_v52  ;;  %v935_v52 = vmul.f32 (!%p3019_p9), %v934_v50, %v933_v49 }
 0x1a6   : > { %v941_v54 = vcombine.high (!%p3019_p9), %v935_v52, %v935_v52  ;;  %v944_v55 = vsel (!%p3019_p9), %vm943_vm0, %v935_v52, 0.0  ;;  %v996_v3 = vmul.f32 (!%p3019_p9), %v995_v59, %v935_v52 }
 0x1a7   : > { %1492 = vmatpush1.bf16.msra.mxu0 %v1491_v57  ;;  %v945_v57 = vrot.slane (!%p3019_p9), %v944_v55, 4 }
 0x1a8   : > { %1494 = vmatprep.subr.bf16.mxu0 %v1493_v58  ;;  %v1026_v58 = vsel (!%p3019_p9), %vm943_vm0, %v1017_v51, 0.0  ;;  %v951_v60 = vsel (!%p3019_p9), %vm943_vm0, %v941_v54, 0.0  ;;  %v998_v7 = vcombine.high (!%p3019_p9), %v996_v3, %v996_v3  ;;  %v1000_v8 = vsel (!%p3019_p9), %vm943_vm0, %v996_v3, 0.0  ;;  %v1033_v51 = vld [vmem:[%s735_s9] sm:$0x3] (!%p3019_p9) }
 0x1a9   : > { %v946_v62 = vadd.f32 (!%p3019_p9), %v945_v57, %v944_v55  ;;  %v1027_v2 = vrot.slane (!%p3019_p9), %v1026_v58, 4 }
 0x1ab   : > { %1496 = vmatpush1.bf16.msra.mxu0 %v1495_v63  ;;  %v952_v63 = vrot.slane (!%p3019_p9), %v951_v60, 4  ;;  %v947_v4 = vrot.slane (!%p3019_p9), %v946_v62, 2  ;;  %v1028_v16 = vadd.f32 (!%p3019_p9), %v1027_v2, %v1026_v58 }
 0x1ac   : > { %1498 = vmatprep.subr.bf16.mxu0 %v1497_v0  ;;  %v994_v0 = vsel (!%p3019_p9), %vm993_vm1, %v3032_v48, 1.0 }
 0x1ad   : > { %1773 = vlog2.f32 (!%p3019_p9), %v994_v0  ;;  %v948_v9 = vadd.f32 (!%p3019_p9), %v947_v4, %v946_v62 }
 0x1af   : > { %1500 = vmatpush1.bf16.msra.mxu0 %v1499_v5  ;;  %v953_v5 = vadd.f32 (!%p3019_p9), %v952_v63, %v951_v60 }
 0x1b0   : > { %1502 = vmatprep.subr.bf16.mxu0 %v1501_v6  ;;  %v1021_v6 = vadd.f32 (!%p3019_p9), %v1020_v61, %v1019_v53  ;;  %v1038_v61 = vrot.slane (!%p3019_p9), %v1033_v51, %v964_v13 }
 0x1b1   : > { %v954_v10 = vrot.slane (!%p3019_p9), %v953_v5, 2 }
 0x1b3   : > { %1504 = vmatpush1.bf16.msra.mxu0 %v1503_v11  ;;  %v960_v11 = vld [vmem:[%s746_s7] sm:$0x3] (!%p3019_p9)  ;;  %v955_v19 = vadd.f32 (!%p3019_p9), %v954_v10, %v953_v5 }
 0x1b4   : > { %1506 = vmatprep.subr.bf16.mxu0 %v1505_v12  ;;  %v1001_v12 = vrot.slane (!%p3019_p9), %v1000_v8, 4  ;;  %v965_v22 = vrot.slane (!%p3019_p9), %v960_v11, %v964_v13  ;;  %v1072_v5 = vld [vmem:[%s2945_s13] ss:$8 sm:$0x3] (!%p3019_p9) }
 0x1b5   : > { %v956_v26 = vrot.slane (!%p3019_p9), %v955_v19, 1 }
 0x1b6   : > { %v1002_v20 = vadd.f32 (!%p3019_p9), %v1001_v12, %v1000_v8 }
 0x1b7   : > { %1508 = vmatpush1.bf16.msra.mxu0 %v1507_v17  ;;  %v1007_v17 = vsel (!%p3019_p9), %vm943_vm0, %v998_v7, 0.0  ;;  %v957_v31 = vadd.f32 (!%p3019_p9), %v956_v26, %v955_v19 }
 0x1b8   : > { %1510 = vmatprep.subr.bf16.mxu0 %v1509_v18  ;;  %v949_v18 = vrot.slane (!%p3019_p9), %v948_v9, 1  ;;  %v1008_v21 = vrot.slane (!%p3019_p9), %v1007_v17, 4  ;;  %v1003_v27 = vrot.slane (!%p3019_p9), %v1002_v20, 2 }
 0x1ba   : > { %v950_v25 = vadd.f32 (!%p3019_p9), %v949_v18, %v948_v9  ;;  %v1009_v28 = vadd.f32 (!%p3019_p9), %v1008_v21, %v1007_v17 }
 0x1bb   : > { %1512 = vmatpush1.bf16.msra.mxu0 %v1511_v23  ;;  %v968_v23 = vsub.s32 (!%p3019_p9), 1, %v3051_v1 }
 0x1bc   : > { %1514 = vmatprep.subr.bf16.mxu0 %v1513_v24  ;;  %v1022_v24 = vrot.slane (!%p3019_p9), %v1021_v6, 2  ;;  %v958_v32 = vmul.f32 (!%p3019_p9), 0.5, %v950_v25 }
 0x1bd   : > { %v1042_v4 = vrot.slane (!%p3019_p9), %v1033_v51, %v968_v23 }
 0x1bf   : > { %1516 = vmatpush1.bf16.msra.mxu0 %v1515_v29  ;;  %v979_v29 = vunpack.c.0.s8 (!%p3019_p9), %v978_v15 }
 0x1c0   : > { %1518 = vmatprep.subr.bf16.mxu0 %v1517_v30  ;;  %v1029_v30 = vrot.slane (!%p3019_p9), %v1028_v16, 2 }
 0x1c3   : > { %1520 = vmatpush1.bf16.msra.mxu0 %v1519_v33  ;;  %v969_v33 = vrot.slane (!%p3019_p9), %v960_v11, %v968_v23 }
 0x1c6   : > { %905 = vmatmul.mubr.f32.vlgmr.msra.gmra.mrb[0].mxu0 %v774_v34  ;;  %v1010_v34 = vrot.slane (!%p3019_p9), %v1009_v28, 2 }
 0x299   : > { %v906_v37 = vpop.f32.mrb[0].mxu0 }
 0x29a   : > { %v915_v39 = vmul.f32 %v913_v35, %v906_v37  ;;  %v908_v40 = vpop.f32.mrb[1].mxu0  ;;  %v1774_v35 = vpop.eup (!%p3019_p9), %1773  ;;  %v959_v37 = vmul.f32 (!%p3019_p9), 0.5, %v957_v31 }
 0x29b   : > { %v916_v42 = vmul.f32 %v914_v36, %v908_v40  ;;  %931 = sbr.rel (%p3019_p9) target bundleno = 700 (0x2bc), region = 84  ;;  %v1023_v36 = vadd.f32 (!%p3019_p9), %v1022_v24, %v1021_v6  ;;  %v1030_v40 = vadd.f32 (!%p3019_p9), %v1029_v30, %v1028_v16 }
 0x29c   : > { %v918_v43 = vmul.f32 %v917_v38, %v915_v39  ;;  %v1004_v39 = vadd.f32 (!%p3019_p9), %v1003_v27, %v1002_v20 }
 0x29d   : > { %v919_v45 = vmul.f32 %v917_v38, %v916_v42  ;;  %v972_v38 = vmul.f32 (!%p3019_p9), %v965_v22, %v958_v32  ;;  %v1050_v42 = vmul.f32 (!%p3019_p9), 0.6931472, %v1774_v35  ;;  %v1031_v53 = vrot.slane (!%p3019_p9), %v1030_v40, 1 }
 0x29e   : > { %v920_v46 = vadd.f32 %v918_v43, %v911_v41  ;;  %v1011_v41 = vadd.f32 (!%p3019_p9), %v1010_v34, %v1009_v28  ;;  %v973_v43 = vmul.f32 (!%p3019_p9), %v969_v33, %v959_v37  ;;  %v1005_v52 = vrot.slane (!%p3019_p9), %v1004_v39, 1 }
 0x29f   : > { %v921_v47 = vadd.f32 %v919_v45, %v912_v44  ;;  %v982_v44 = vsub.s32 (!%p3019_p9), %v979_v29, %v3051_v1  ;;  %v1442_v45 = vld [vmem:[%s2869_s16 + $0x4] ss:$8 sm:$0x3] (!%p3019_p9)  ;;  %v1051_v49 = vmul.f32 (!%p3019_p9), %v1050_v42, %v3032_v48  ;;  %v1032_v3 = vadd.f32 (!%p3019_p9), %v1031_v53, %v1030_v40  ;;  %v1443_v29 = vld [vmem:[%s2945_s13 + $0x1] ss:$8 sm:$0x3] (!%p3019_p9) }
 0x2a0   : > { %922 = vst [vmem:[#allocation2] sm:$0x1f] %v920_v46  ;;  %v938_v46 = vld [vmem:[%s757_s17] sm:$0x3] (!%p3019_p9)  ;;  %v976_v50 = vcombine.low (!%p3019_p9), %v972_v38, %v973_v43  ;;  %v1012_v54 = vrot.slane (!%p3019_p9), %v1011_v41, 1  ;;  %v1006_v0 = vadd.f32 (!%p3019_p9), %v1005_v52, %v1004_v39 }
 0x2a1   : > { %923 = vst [vmem:[#allocation2 + $0x8] sm:$0x1f] %v921_v47  ;;  %v1024_v47 = vrot.slane (!%p3019_p9), %v1023_v36, 1  ;;  %v1052_v55 = vsel (!%p3019_p9), %vm993_vm1, %v1051_v49, 0.0  ;;  %v939_v57 = vmul.f32 (!%p3019_p9), %v1442_v45, %v938_v46  ;;  %v1046_v15 = vmul.f32 (!%p3019_p9), %v1042_v4, %v1032_v3 }
 0x2a2   : > { %v983_v58 = vrot.slane %v976_v50, %v982_v44  ;;  %v1054_v59 = vcombine.high %v1052_v55, %v1052_v55  ;;  %v1056_v62 = vsel %vm943_vm0, %v1052_v55, 0.0  ;;  %v1013_v6 = vadd.f32 %v1012_v54, %v1011_v41 }
 0x2a3   : > { %v1025_v60 = vadd.f32 %v1024_v47, %v1023_v36  ;;  %v1057_v1 = vrot.slane %v1056_v62, 4  ;;  %v1014_v13 = vmul.f32 -0.5, %v1006_v0 }
 0x2a4   : > { %v990_v63 = vrot.slane %v983_v58, %v982_v44  ;;  %v1063_v2 = vsel %vm943_vm0, %v1054_v59, 0.0  ;;  %v1015_v16 = vmul.f32 -0.5, %v1013_v6 }
 0x2a5   : > { %v1064_v7 = vrot.slane %v1063_v2, 4  ;;  %v1058_v8 = vadd.f32 %v1057_v1, %v1056_v62  ;;  %v1045_v11 = vmul.f32 %v1038_v61, %v1025_v60 }
 0x2a6   : > { %v992_v48 = vsub.f32 %v939_v57, %v990_v63  ;;  %v1048_v21 = vadd.f32 %v1046_v15, %v1015_v16 }
 0x2a7   : > { %v1065_v10 = vadd.f32 %v1064_v7, %v1063_v2  ;;  %v1059_v14 = vrot.slane %v1058_v8, 2  ;;  %v1047_v20 = vadd.f32 %v1045_v11, %v1014_v13 }
 0x2a8   : > { %v1073_v12 = vadd.f32 %v1072_v5, %v992_v48 }
 0x2a9   : > { %v1066_v17 = vrot.slane %v1065_v10, 2  ;;  %v1060_v18 = vadd.f32 %v1059_v14, %v1058_v8 }
 0x2aa   : > { %1078 = vst.msk [vmem:[%s2945_s13] ss:$8 sm:$0x3] %vm3081_vm2, %v1073_v12 }
 0x2ab   : > { %v1067_v19 = vadd.f32 %v1066_v17, %v1065_v10  ;;  %v1061_v56 = vrot.slane %v1060_v18, 1 }
 0x2ad   : > { %v1068_v22 = vrot.slane %v1067_v19, 1  ;;  %v1062_v23 = vadd.f32 %v1061_v56, %v1060_v18 }
 0x2af   : > { %v1069_v24 = vadd.f32 %v1068_v22, %v1067_v19  ;;  %v1070_v25 = vsub.f32 %v1047_v20, %v1062_v23 }
 0x2b1   : > { %v1071_v26 = vsub.f32 %v1048_v21, %v1069_v24 }
 0x2b3   : > { %v1084_v27 = vcombine.low %v1070_v25, %v1071_v26 }
 0x2b5   : > { %v1091_v28 = vrot.slane %v1084_v27, %v982_v44 }
 0x2b7   : > { %v1098_v30 = vrot.slane %v1091_v28, %v982_v44 }
 0x2b9   : > { %v1100_v31 = vadd.f32 %v1443_v29, %v1098_v30 }
 0x2bb   : > { %1444 = vst.msk [vmem:[%s2945_s13 + $0x1] ss:$8 sm:$0x3] %vm3081_vm2, %v1100_v31 }
 0x2bc PF: > { %s3382_s16 = sld [smem:[#allocation49_spill]] }
 0x2c2   : > { %p1445_p11 = scmp.ne.s32.totalorder %s3382_s16, 1 }
 0x2c3   : > { %v1107_v32 = vld [vmem:[#allocation2] sm:$0x1f] (!%p1445_p11)  ;;  %v1108_v33 = vld [vmem:[#allocation2 + $0x8] sm:$0x1f] (!%p1445_p11)  ;;  %vm1111_vm3 = vcmask (!%p1445_p11), 1044480   ;;  %v1137_v46 = vlaneseq (!%p1445_p11) }
 0x2c4   : > { %1106 = sbr.rel (%p1445_p11) target bundleno = 734 (0x2de), region = 88  ;;  %v1112_v34 = vsel (!%p1445_p11), %vm1111_vm3, %v1107_v32, 0.0  ;;  %v1119_v35 = vsel (!%p1445_p11), %vm1111_vm3, %v1108_v33, 0.0  ;;  %v2210_v44 = vmov (!%p1445_p11), 1966171168   ;;  %v1109_v47 = vmul.f32 (!%p1445_p11), 2.0, %v1107_v32 }
 0x2c5   : > { %v1113_v36 = vrot.slane (!%p1445_p11), %v1112_v34, 4  ;;  %v1120_v37 = vrot.slane (!%p1445_p11), %v1119_v35, 4  ;;  %v1135_v45 = vunpack.c.l.s4 (!%p1445_p11), %v2210_v44  ;;  %v1110_v49 = vmul.f32 (!%p1445_p11), 2.0, %v1108_v33  ;;  %v1128_v0 = vld [vmem:[%s2945_s13] ss:$8 sm:$0x3] (!%p1445_p11) }
 0x2c6   : > { %v1138_v55 = vshrl.u32 (!%p1445_p11), %v1137_v46, 7  ;;  %vm1152_vm4 = vcmp.lt.s32.totalorder (!%p1445_p11), %v1137_v46, 256 }
 0x2c7   : > { %v1114_v38 = vadd.f32 (!%p1445_p11), %v1113_v36, %v1112_v34  ;;  %v1121_v39 = vadd.f32 (!%p1445_p11), %v1120_v37, %v1119_v35  ;;  %v1136_v54 = vunpack.c.0.s8 (!%p1445_p11), %v1135_v45 }
 0x2c9   : > { %v1115_v40 = vrot.slane (!%p1445_p11), %v1114_v38, 2  ;;  %v1122_v41 = vrot.slane (!%p1445_p11), %v1121_v39, 2  ;;  %v1139_v61 = vsub.s32 (!%p1445_p11), %v1136_v54, %v1138_v55 }
 0x2cb   : > { %v1116_v42 = vadd.f32 %v1115_v40, %v1114_v38  ;;  %v1123_v43 = vadd.f32 %v1122_v41, %v1121_v39 }
 0x2cd   : > { %v1117_v50 = vrot.slane %v1116_v42, 1  ;;  %v1124_v51 = vrot.slane %v1123_v43, 1 }
 0x2cf   : > { %v1118_v52 = vadd.f32 %v1117_v50, %v1116_v42  ;;  %v1125_v53 = vadd.f32 %v1124_v51, %v1123_v43 }
 0x2d1   : > { %v1126_v57 = vsub.f32 %v1109_v47, %v1118_v52  ;;  %v1127_v58 = vsub.f32 %v1110_v49, %v1125_v53 }
 0x2d3   : > { %v1129_v59 = vmul.f32 -0.5, %v1126_v57  ;;  %v1130_v60 = vmul.f32 -0.5, %v1127_v58 }
 0x2d5   : > { %v1133_v62 = vcombine.high %v1129_v59, %v1130_v60 }
 0x2d7   : > { %v1140_v63 = vrot.slane %v1133_v62, %v1139_v61 }
 0x2d9   : > { %v1147_v1 = vrot.slane %v1140_v63, %v1139_v61 }
 0x2db   : > { %v1149_v2 = vadd.f32 %v1147_v1, %v1128_v0 }
 0x2dd   : > { %1154 = vst.msk [vmem:[%s2945_s13] ss:$8 sm:$0x3] %vm1152_vm4, %v1149_v2 }
 0x2de PF: > { %s3383_s12 = sld [smem:[#allocation50_spill]]  ;;  %s3384_s29 = sld [smem:[#allocation37_spill]] }
 0x2df   : > { %s3385_s9 = sld [smem:[#allocation56_spill]]  ;;  %s3386_s15 = sld [smem:[#allocation73_spill]] }
 0x2e0   : > { %s1171_s4 = sshll.u32 %s2945_s13, 4  ;;  %s2211_s21 = smov [#allocation16]   ;;  %s1172_s4 = int_to_ptr.vmem [resolvable:$true] %s1171_s4 }
 0x2e1   : > { %s1959_s6 = scalar_lea.vmem %s1172_s4, 256  ;;  %s1963_s26 = sshll.u32 %s2211_s21, 4  ;;  %s1964_s26 = int_to_ptr.vmem [resolvable:$false] %s1963_s26 }
 0x2e2   : > { %p1960_p1 = scmp.ne.s32.totalorder %s1172_s4, %s1959_s6  ;;  %s1965_s19 = scalar_lea.vmem %s1964_s26, 512 }
 0x2e3   : > { %p1966_p5 = scmp.lt.s32.totalorder %s1172_s4, %s1964_s26  ;;  %p1967_p3 = scmp.lt.s32.totalorder %s1965_s19, %s1959_s6 }
 0x2e4   : > { %s1456_s3 = sshll.u32 %s3383_s12, 8  ;;  %s3388_s0 = sand.u32 1, %s3384_s29  }
 0x2e5   : > { %s3387_s5 = smov %s3386_s15  ;;  %s3099_s17 = scalar_lea.hbm %s3386_s15, %s1456_s3 }
 0x2e6   : > { %s1157_s1 = scalar_lea.sflag [#allocation9], %s3388_s0  ;;  %p3389_p7 = scmp.ne.s32.totalorder %s3385_s9, 0 }
 0x2e7   : > { %p1968_p10 = por %p1967_p3, %p1966_p5 }
 0x2e8   : > { %p1961_p13 = pnand %p1960_p1, %p3389_p7 }
 0x2ea   : > { %p1962_p12 = pneg %p1961_p13 }
 0x2ec   : > { %p1969_p6 = pnand %p1968_p10, %p1962_p12 }
 0x2ee   : > { %1972 = shalt.err (!%p1969_p6)
}
 0x2ef   : > { %s1973_s13 = scalar_lea.hbm %s3099_s17, 256  ;;  %s1977_s2 = scalar_lea.hbm %s3387_s5, 512 }
 0x2f0   : > { %p1974_p2 = scmp.ne.s32.totalorder %s3099_s17, %s1973_s13  ;;  %p1978_p0 = scmp.lt.u32.totalorder %s3099_s17, %s3387_s5 }
 0x2f1   : > { %p1979_p9 = scmp.lt.u32.totalorder %s1977_s2, %s1973_s13  ;;  %p1981_p1 = scmp.lt.u32.totalorder %s1973_s13, %s3099_s17 }
 0x2f2   : > { %p1975_p4 = pnand %p1974_p2, %p3389_p7 }
 0x2f3   : > { %p1980_p11 = por %p1979_p9, %p1978_p0 }
 0x2f4   : > { %p1976_p8 = pneg %p1975_p4 }
 0x2f5   : > { %p1982_p13 = por %p1981_p1, %p1980_p11 }
 0x2f7   : > { %p1983_p12 = pnand %p1982_p13, %p1976_p8 }
 0x2f9   : > { %1986 = shalt.err (!%p1983_p12)
}
 0x2fa   : > { %1543 = dma.vmem_to_hbm [thread:$0]  (%p3389_p7), %s1172_s4, 256, %s3099_s17, %s1157_s1  }
 0x2fb PF: > { %s3390_s23 = sld [smem:[#allocation36_spill]]  ;;  %s3391_s10 = sld [smem:[#allocation57_spill]] }
 0x2fc   : > { %p1578_p5 = scmp.ge.s32.totalorder %s2195_s11, 2 }
 0x301   : > { %s1183_s28 = sand.u32 1, %s3390_s23   ;;  %p3392_p3 = scmp.ne.s32.totalorder %s3391_s10, 0 }
 0x302   : > { %s1184_s24 = scalar_lea.sflag [#allocation9], %s1183_s28 }
 0x303   : > { %p1574_p10 = pnand %p1578_p5, %p3392_p3 }
 0x305   : > { %2102 = dma.done.wait (!%p1574_p10), %s1184_s24, 256  }
 0x306   : > { %2104 = vsyncadd (!%p1574_p10), %s1184_s24, 4294967040  ;;  %s46_s11 = sadd.s32 1, %s2195_s11   ;;  %s3394_s2 = sld [smem:[#allocation37_spill]] }
 0x307   : > { %p3126_p6 = scmp.ge.s32.totalorder %s46_s11, 6   ;;  %s3395_s21 = sld [smem:[#allocation38_spill]] }
 0x308   : > { %s3396_s22 = sld [smem:[#allocation55_spill]]  ;;  %s3397_s23 = sld [smem:[#allocation40_spill]] }
 0x309   : > { %s3398_s24 = sld [smem:[#allocation41_spill]]  ;;  %s3399_s26 = sld [smem:[#allocation42_spill]] }
 0x30a   : > { %s3400_s27 = sld [smem:[#allocation43_spill]]  ;;  %s3401_s28 = sld [smem:[#allocation60_spill]] }
 0x30b   : > { %s3402_s12 = sld [smem:[#allocation45_spill]]  ;;  %s3403_s13 = sld [smem:[#allocation63_spill]] }
 0x30c   : > { %s3404_s14 = sld [smem:[#allocation46_spill]]  ;;  %s3405_s15 = sld [smem:[#allocation47_spill]] }
 0x30d   : > { %s3406_s9 = sld [smem:[#allocation58_spill]]  ;;  %s3407_s3 = sld [smem:[#allocation48_spill]] }
 0x30e   : > { %s3408_s19 = sld [smem:[#allocation62_spill]]  ;;  %s3409_s8 = sld [smem:[#allocation51_spill]] }
 0x30f   : > { %s3410_s0 = sld [smem:[#allocation52_spill]]  ;;  %s3411_s1 = sld [smem:[#allocation53_spill]] }
 0x310   : > { %s3412_s25 = smov %s3447_s20  ;;  %s3413_s4 = sld [smem:[#allocation54_spill]] }
 0x311   : > { %s3415_s29 = smov %s2147_s30  ;;  %s3416_s30 = smov %s3402_s12 }
 0x312   : > { %s3418_s17 = smov %s2171_s18  ;;  %45 = sbr.rel (!%p3126_p6) target bundleno = 57 (0x39), region = 175 }
 0x313   : > { %s3417_s16 = smov %s3406_s9  ;;  %s3419_s18 = smov %s3407_s3 }
 0x314   : > { %s3420_s20 = smov %s3409_s8 }
 0x316   : > { %s3421_s12 = smov %s3413_s4 }
 0x319   :  { %1189 = vsyncpa [#allocation8], 1 }
 0x31a   :  { %1191 = vsyncpa [#allocation8 + $0x1], 1 }
 0x31b   :  { %1192 = vsyncpa [#allocation11], 1 }
 0x31c   :  { %1194 = vsyncpa [#allocation11 + $0x1], 1 }
 0x31d   :  { %1195 = vsyncpa [#allocation14], 1 }
 0x31e   :  { %1197 = vsyncpa [#allocation14 + $0x1], 1 }
 0x31f   :  { %1198 = vsyncpa [#allocation9], 1 }
 0x320   :  { %1200 = vsyncpa [#allocation9 + $0x1], 1 }

</bundles_post_ra>
